<compile_context>
chip_gen: v7x
topology: tpu7x:2x2x1
jax: 0.10.0
libtpu: 0.0.40
codegen_flags: <defaults>
</compile_context>

<pallas_src>
import math
import numpy as np
import jax
import jax.numpy as jnp
from jax.experimental import pallas as pl
from jax.experimental.pallas import tpu as pltpu

LN_EPS = 1e-5  # PyTorch nn.LayerNorm default


def _vmem_capacity_bytes():
    """Physical VMEM per TensorCore (generation-aware), with a safe default."""
    try:
        cap = getattr(pltpu.get_tpu_info(), "vmem_capacity_bytes", None)
        if cap:
            return int(cap)
    except Exception:
        pass
    return 64 * 1024 * 1024  # conservative default = v7x per-TC VMEM


def _out_layer_kernel(x_ref, cscale_ref, cshift_ref, w_ref, b_ref, o_ref):
    dblk, hblk, wdim, c = x_ref.shape
    g_tot, _, nc = w_ref.shape
    p1 = o_ref.shape[3]
    rows = dblk * hblk * wdim

    # LayerNorm statistics in f32 (two-pass / mean-subtracted variance).
    x = x_ref[...].astype(jnp.float32)                       # (dblk, hblk, W, C)
    mean = jnp.mean(x, axis=-1, keepdims=True)
    xm = x - mean
    var = jnp.mean(xm * xm, axis=-1, keepdims=True)
    inv = jax.lax.rsqrt(var + LN_EPS)

    # LN affine + adaLN modulation folded into one FMA (precombined in wrapper):
    #   y = x_hat * (gamma*(scale+1)) + (beta*(scale+1) + shift)
    cs = cscale_ref[...][:, :, None, :]                       # (dblk, 1, 1, C)
    cb = cshift_ref[...][:, :, None, :]
    mod = (xm * inv) * cs + cb                                # (dblk, hblk, W, C)

    a16 = mod.astype(jnp.bfloat16).reshape(rows, c)           # MXU lhs (bf16)

    # out_layer Linear on the MXU (bf16 operands, f32 accumulation); one
    # (C, p2*vd) weight slice per (p0, p1) patch position, stored directly
    # into the un-patchified output layout.
    for g in range(g_tot):
        i0, i1 = g // p1, g % p1
        y = jnp.dot(a16, w_ref[g], preferred_element_type=jnp.float32)
        y = y + b_ref[g]                                      # (rows, Nc)
        o_ref[:, pl.ds(i0, 1), :, pl.ds(i1, 1), :, :] = (
            y.reshape(dblk, 1, hblk, 1, wdim, nc).astype(o_ref.dtype))


def _choose_block_shape(D, H, W, C, out_dim, budget_bytes):
    """Largest (dblk, hblk) divisor pair fitting the VMEM budget while keeping
    >= 2 grid steps (so v7x's two TensorCores both get work)."""
    def divisors(n):
        return [d for d in range(1, n + 1) if n % d == 0]

    def tile_bytes(db, hb):
        rows = db * hb * W
        in_bb = rows * C * 2 * 2                  # bf16 input block, double-buffered
        out_bb = rows * out_dim * 2 * 2           # bf16 output block, double-buffered
        tables = db * 8 * C * 4 * 2 * 2           # two f32 (dblk,1,C) tables (padded)
        wgt = (C * out_dim + out_dim) * 2 * 2     # bf16 weight slices + bias
        temps = rows * (4 * C + out_dim) * 4      # live f32 intermediates
        return in_bb + out_bb + tables + wgt + temps

    best, best_rows = None, -1
    for db in divisors(D):
        for hb in divisors(H):
            steps = (D // db) * (H // hb)
            if steps < 2 and D * H > 1:
                continue                          # keep both TCs busy (megacore)
            if tile_bytes(db, hb) > budget_bytes:
                continue
            rows = db * hb * W
            if rows > best_rows or (rows == best_rows and db > best[0]):
                best, best_rows = (db, hb), rows
    return best if best is not None else (1, 1)


def out_layer_forward(params, visual_embed, text_embed, time_embed,
                      visual_cu_seqlens, patch_size):
    """Pallas-backed equivalent of OutLayer.forward.

    visual_embed:      (D, H, W, model_dim) channel-last (f32 or bf16)
    text_embed:        unused (kept for signature parity)
    time_embed:        (B, time_dim)
    visual_cu_seqlens: (B+1,) int32 cumulative frame counts
    """
    del text_embed  # unused in the reference forward
    D, H, W, C = visual_embed.shape
    p0, p1, p2 = patch_size
    out_dim = params["out_w"].shape[0]
    vd = out_dim // (p0 * p1 * p2)
    G, Nc = p0 * p1, p2 * vd

    # --- tiny modulation MLP + adaLN/LN-affine fold (XLA glue on (D, C)) -----
    # TODO(synk): the SiLU->Linear->repeat_interleave modulation path stays as
    # tiny XLA glue (data-dependent repeat counts); cost is negligible.
    te = time_embed.astype(jnp.float32)
    silu = te * jax.nn.sigmoid(te)
    mod = silu @ params["mod_w"].T.astype(jnp.float32) \
        + params["mod_b"].astype(jnp.float32)
    reps = jnp.diff(visual_cu_seqlens)
    mod = jnp.repeat(mod, reps, axis=0, total_repeat_length=D)      # (D, 2C)
    shift, scale = jnp.split(mod, 2, axis=-1)                       # (D, C) each
    gamma = params["ln_w"].astype(jnp.float32)[None, :]
    beta = params["ln_b"].astype(jnp.float32)[None, :]
    scale_p1 = scale + 1.0
    cscale = (gamma * scale_p1).reshape(D, 1, C)                    # (D, 1, C)
    cshift = (beta * scale_p1 + shift).reshape(D, 1, C)

    # --- un-patchify folded into the weight layout -----------------------------
    # Reorder out_layer columns from (vd, p0, p1, p2) to (p0, p1, p2, vd) and
    # split into per-(p0,p1) slices; the kernel then writes the final layout.
    w = params["out_w"].astype(jnp.float32).reshape(vd, p0, p1, p2, C)
    w = jnp.transpose(w, (1, 2, 3, 0, 4)).reshape(G, Nc, C)
    w_g = jnp.transpose(w, (0, 2, 1)).astype(jnp.bfloat16)          # (G, C, Nc)
    b = params["out_b"].astype(jnp.float32).reshape(vd, p0, p1, p2)
    b_g = jnp.transpose(b, (1, 2, 3, 0)).reshape(G, 1, Nc)          # (G, 1, Nc)

    # --- generation-aware tiling ----------------------------------------------
    vmem_cap = _vmem_capacity_bytes()
    vmem_limit = max(min(int(vmem_cap * 0.75), vmem_cap - (8 << 20)), 32 << 20)
    budget = vmem_cap // 2
    dblk, hblk = _choose_block_shape(D, H, W, C, out_dim, budget)
    grid = (D // dblk, H // hblk)

    y6 = pl.pallas_call(
        _out_layer_kernel,
        out_shape=jax.ShapeDtypeStruct((D, p0, H, p1, W, Nc), visual_embed.dtype),
        grid_spec=pltpu.PrefetchScalarGridSpec(
            num_scalar_prefetch=0,
            grid=grid,
            in_specs=[
                pl.BlockSpec((dblk, hblk, W, C), lambda di, hi: (di, hi, 0, 0)),  # x
                pl.BlockSpec((dblk, 1, C), lambda di, hi: (di, 0, 0)),   # cscale
                pl.BlockSpec((dblk, 1, C), lambda di, hi: (di, 0, 0)),   # cshift
                pl.BlockSpec((G, C, Nc), lambda di, hi: (0, 0, 0)),      # weights
                pl.BlockSpec((G, 1, Nc), lambda di, hi: (0, 0, 0)),      # bias
            ],
            out_specs=pl.BlockSpec((dblk, p0, hblk, p1, W, Nc),
                                   lambda di, hi: (di, 0, hi, 0, 0, 0)),
        ),
        compiler_params=pltpu.CompilerParams(
            dimension_semantics=("parallel", "parallel"),
            vmem_limit_bytes=vmem_limit,
        ),
    )(visual_embed, cscale, cshift, w_g, b_g)

    # Layout-only (free) reshape: (D, p0, H, p1, W, p2*vd) -> (D*p0, H*p1, W*p2, vd)
    return y6.reshape(D * p0, H * p1, W * p2, vd)


def reference_forward(params, visual_embed, time_embed, visual_cu_seqlens,
                      patch_size):
    """Pure-JAX f32 reference mirroring the PyTorch module."""
    D, H, W, C = visual_embed.shape
    te = time_embed.astype(jnp.float32)
    silu = te * jax.nn.sigmoid(te)
    mod = silu @ params["mod_w"].T.astype(jnp.float32) + params["mod_b"]
    reps = jnp.diff(visual_cu_seqlens)
    mod = jnp.repeat(mod, reps, axis=0, total_repeat_length=D)
    shift, scale = jnp.split(mod, 2, axis=-1)

    x = visual_embed.astype(jnp.float32)
    mean = jnp.mean(x, axis=-1, keepdims=True)
    var = jnp.mean((x - mean) ** 2, axis=-1, keepdims=True)
    normed = (x - mean) * jax.lax.rsqrt(var + LN_EPS)
    normed = normed * params["ln_w"].astype(jnp.float32) \
        + params["ln_b"].astype(jnp.float32)
    ve = normed * (scale[:, None, None, :] + 1.0) + shift[:, None, None, :]
    y = ve @ params["out_w"].T.astype(jnp.float32) \
        + params["out_b"].astype(jnp.float32)

    p0, p1, p2 = patch_size
    out_dim = y.shape[-1]
    vd = out_dim // (p0 * p1 * p2)
    y = y.reshape(D, H, W, vd, p0, p1, p2)
    y = jnp.transpose(y, (0, 4, 1, 5, 2, 6, 3))
    return y.reshape(D * p0, H * p1, W * p2, vd)


if __name__ == "__main__":
    model_dim = 128
    time_dim = 32
    visual_dim = 32
    patch_size = (1, 2, 2)
    out_dim = math.prod(patch_size) * visual_dim     # 128

    batch = 2
    D, H, W = 4, 16, 16       # 2 frames per sample

    key = jax.random.PRNGKey(0)
    k1, k2, k3, k4, k5, k6, k7, k8, k9 = jax.random.split(key, 9)

    params = {
        "ln_w": 1.0 + 0.1 * jax.random.normal(k1, (model_dim,), jnp.float32),
        "ln_b": 0.1 * jax.random.normal(k2, (model_dim,), jnp.float32),
        "out_w": 0.02 * jax.random.normal(k3, (out_dim, model_dim), jnp.float32),
        "out_b": 0.02 * jax.random.normal(k4, (out_dim,), jnp.float32),
        # modulation_out is zero-initialized in the module __init__; use small
        # random values here so the adaLN path is actually exercised.
        "mod_w": 0.05 * jax.random.normal(k5, (2 * model_dim, time_dim), jnp.float32),
        "mod_b": 0.05 * jax.random.normal(k6, (2 * model_dim,), jnp.float32),
    }

    # bf16 at the HBM boundary (activations); f32 weights cast in the wrapper.
    visual_embed = jax.random.normal(
        k7, (D, H, W, model_dim), jnp.float32).astype(jnp.bfloat16)
    time_embed = jax.random.normal(k8, (batch, time_dim), jnp.float32)
    text_embed = jax.random.normal(k9, (batch, 10, model_dim), jnp.float32)  # unused
    visual_cu_seqlens = jnp.array([0, 2, 4], dtype=jnp.int32)  # 2 frames/sample

    out = out_layer_forward(params, visual_embed, text_embed, time_embed,
                            visual_cu_seqlens, patch_size)
    out = jax.block_until_ready(out)

    ref = reference_forward(params, visual_embed, time_embed,
                            visual_cu_seqlens, patch_size)
    ref = jax.block_until_ready(ref)

    assert out.shape == (D * patch_size[0], H * patch_size[1],
                         W * patch_size[2], visual_dim), out.shape
    # bf16 HBM boundary + bf16 MXU operands vs. an all-f32 reference.
    np.testing.assert_allclose(np.asarray(out).astype(np.float32),
                               np.asarray(ref).astype(np.float32),
                               rtol=2e-2, atol=1e-2)
    print("KERNEL_OK")
</pallas_src>

<mosaic_0001>
module attributes {stable_mosaic.version = 11 : i64} {
  func.func @_out_layer_kernel(%arg0: i32, %arg1: i32, %arg2: memref<4x8x16x128xbf16, #tpu.memory_space<vmem>>, %arg3: memref<4x1x128xf32, #tpu.memory_space<vmem>>, %arg4: memref<4x1x128xf32, #tpu.memory_space<vmem>>, %arg5: memref<2x128x64xbf16, #tpu.memory_space<vmem>>, %arg6: memref<2x1x64xf32, #tpu.memory_space<vmem>>, %arg7: memref<4x1x8x2x16x64xbf16, #tpu.memory_space<vmem>>) attributes {dimension_semantics = [#tpu.dimension_semantics<parallel>, #tpu.dimension_semantics<parallel>], iteration_bounds = array<i64: 1, 2>, scalar_prefetch = 0 : i64, scratch_operands = 0 : i64, tpu.core_type = #tpu.core_type<tc>, window_params = [{transform_indices = @transform_0, window_bounds = array<i64: 4, 8, 16, 128>}, {transform_indices = @transform_1, window_bounds = array<i64: 4, 1, 128>}, {transform_indices = @transform_2, window_bounds = array<i64: 4, 1, 128>}, {pipeline_mode = #tpu.pipeline_mode<synchronous>, transform_indices = @transform_3, window_bounds = array<i64: 2, 128, 64>}, {pipeline_mode = #tpu.pipeline_mode<synchronous>, transform_indices = @transform_4, window_bounds = array<i64: 2, 1, 64>}, {transform_indices = @transform_5, window_bounds = array<i64: 4, 1, 8, 2, 16, 64>}]} {
    %c0 = arith.constant 0 : index
    %c0_0 = arith.constant 0 : index
    %c0_1 = arith.constant 0 : index
    %c0_2 = arith.constant 0 : index
    %0 = vector.load %arg2[%c0, %c0_0, %c0_1, %c0_2] : memref<4x8x16x128xbf16, #tpu.memory_space<vmem>>, vector<4x8x16x128xbf16>
    %1 = arith.extf %0 : vector<4x8x16x128xbf16> to vector<4x8x16x128xf32>
    %cst = arith.constant dense<0.000000e+00> : vector<4x8x16xf32>
    %2 = vector.multi_reduction <add>, %1, %cst [3] : vector<4x8x16x128xf32> to vector<4x8x16xf32>
    %3 = vector.shape_cast %2 : vector<4x8x16xf32> to vector<4x8x16x1xf32>
    %cst_3 = arith.constant 1.280000e+02 : f32
    %4 = vector.broadcast %cst_3 : f32 to vector<4x8x16x1xf32>
    %5 = arith.divf %3, %4 : vector<4x8x16x1xf32>
    %6 = vector.broadcast %5 : vector<4x8x16x1xf32> to vector<4x8x16x128xf32>
    %7 = arith.subf %1, %6 : vector<4x8x16x128xf32>
    %8 = arith.mulf %7, %7 : vector<4x8x16x128xf32>
    %cst_4 = arith.constant dense<0.000000e+00> : vector<4x8x16xf32>
    %9 = vector.multi_reduction <add>, %8, %cst_4 [3] : vector<4x8x16x128xf32> to vector<4x8x16xf32>
    %10 = vector.shape_cast %9 : vector<4x8x16xf32> to vector<4x8x16x1xf32>
    %cst_5 = arith.constant 1.280000e+02 : f32
    %11 = vector.broadcast %cst_5 : f32 to vector<4x8x16x1xf32>
    %12 = arith.divf %10, %11 : vector<4x8x16x1xf32>
    %cst_6 = arith.constant 9.99999974E-6 : f32
    %13 = vector.broadcast %cst_6 : f32 to vector<4x8x16x1xf32>
    %14 = arith.addf %12, %13 : vector<4x8x16x1xf32>
    %15 = math.rsqrt %14 : vector<4x8x16x1xf32>
    %c0_7 = arith.constant 0 : index
    %c0_8 = arith.constant 0 : index
    %c0_9 = arith.constant 0 : index
    %16 = vector.load %arg3[%c0_7, %c0_8, %c0_9] : memref<4x1x128xf32, #tpu.memory_space<vmem>>, vector<4x1x128xf32>
    %17 = vector.shape_cast %16 : vector<4x1x128xf32> to vector<4x1x1x128xf32>
    %c0_10 = arith.constant 0 : index
    %c0_11 = arith.constant 0 : index
    %c0_12 = arith.constant 0 : index
    %18 = vector.load %arg4[%c0_10, %c0_11, %c0_12] : memref<4x1x128xf32, #tpu.memory_space<vmem>>, vector<4x1x128xf32>
    %19 = vector.shape_cast %18 : vector<4x1x128xf32> to vector<4x1x1x128xf32>
    %20 = vector.broadcast %15 : vector<4x8x16x1xf32> to vector<4x8x16x128xf32>
    %21 = arith.mulf %7, %20 : vector<4x8x16x128xf32>
    %22 = vector.broadcast %17 : vector<4x1x1x128xf32> to vector<4x8x16x128xf32>
    %23 = arith.mulf %21, %22 : vector<4x8x16x128xf32>
    %24 = vector.broadcast %19 : vector<4x1x1x128xf32> to vector<4x8x16x128xf32>
    %25 = arith.addf %23, %24 : vector<4x8x16x128xf32>
    %26 = arith.truncf %25 : vector<4x8x16x128xf32> to vector<4x8x16x128xbf16>
    %27 = vector.shape_cast %26 : vector<4x8x16x128xbf16> to vector<512x128xbf16>
    %c0_13 = arith.constant 0 : index
    %c0_14 = arith.constant 0 : index
    %c0_15 = arith.constant 0 : index
    %28 = vector.load %arg5[%c0_13, %c0_14, %c0_15] : memref<2x128x64xbf16, #tpu.memory_space<vmem>>, vector<1x128x64xbf16>
    %29 = vector.shape_cast %28 : vector<1x128x64xbf16> to vector<128x64xbf16>
    %cst_16 = arith.constant dense<0.000000e+00> : vector<512x64xf32>
    %30 = tpu.matmul %27, %29, %cst_16 {dimension_numbers = #tpu.dot_dimension_numbers<[1], [0], [0], [1], [0, 0, 1, 1], [], []>} : vector<512x128xbf16>, vector<128x64xbf16>, vector<512x64xf32> -> vector<512x64xf32>
    %c0_17 = arith.constant 0 : index
    %c0_18 = arith.constant 0 : index
    %c0_19 = arith.constant 0 : index
    %31 = vector.load %arg6[%c0_17, %c0_18, %c0_19] : memref<2x1x64xf32, #tpu.memory_space<vmem>>, vector<1x1x64xf32>
    %32 = vector.shape_cast %31 : vector<1x1x64xf32> to vector<1x64xf32>
    %33 = vector.broadcast %32 : vector<1x64xf32> to vector<512x64xf32>
    %34 = arith.addf %30, %33 : vector<512x64xf32>
    %35 = vector.shape_cast %34 : vector<512x64xf32> to vector<4x1x8x1x16x64xf32>
    %36 = arith.truncf %35 : vector<4x1x8x1x16x64xf32> to vector<4x1x8x1x16x64xbf16>
    %c0_20 = arith.constant 0 : index
    %c0_21 = arith.constant 0 : index
    %c0_22 = arith.constant 0 : index
    %c0_23 = arith.constant 0 : index
    %c0_24 = arith.constant 0 : index
    %c0_25 = arith.constant 0 : index
    %37 = vector.load %arg7[%c0_20, %c0_21, %c0_22, %c0_23, %c0_24, %c0_25] : memref<4x1x8x2x16x64xbf16, #tpu.memory_space<vmem>>, vector<4x1x8x1x16x64xbf16>
    tpu.vector_store %arg7[%c0_20, %c0_21, %c0_22, %c0_23, %c0_24, %c0_25], %36 {strides = array<i32>} : memref<4x1x8x2x16x64xbf16, #tpu.memory_space<vmem>>, vector<4x1x8x1x16x64xbf16>,
    %c1 = arith.constant 1 : index
    %c0_26 = arith.constant 0 : index
    %c0_27 = arith.constant 0 : index
    %38 = vector.load %arg5[%c1, %c0_26, %c0_27] : memref<2x128x64xbf16, #tpu.memory_space<vmem>>, vector<1x128x64xbf16>
    %39 = vector.shape_cast %38 : vector<1x128x64xbf16> to vector<128x64xbf16>
    %cst_28 = arith.constant dense<0.000000e+00> : vector<512x64xf32>
    %40 = tpu.matmul %27, %39, %cst_28 {dimension_numbers = #tpu.dot_dimension_numbers<[1], [0], [0], [1], [0, 0, 1, 1], [], []>} : vector<512x128xbf16>, vector<128x64xbf16>, vector<512x64xf32> -> vector<512x64xf32>
    %c1_29 = arith.constant 1 : index
    %c0_30 = arith.constant 0 : index
    %c0_31 = arith.constant 0 : index
    %41 = vector.load %arg6[%c1_29, %c0_30, %c0_31] : memref<2x1x64xf32, #tpu.memory_space<vmem>>, vector<1x1x64xf32>
    %42 = vector.shape_cast %41 : vector<1x1x64xf32> to vector<1x64xf32>
    %43 = vector.broadcast %42 : vector<1x64xf32> to vector<512x64xf32>
    %44 = arith.addf %40, %43 : vector<512x64xf32>
    %45 = vector.shape_cast %44 : vector<512x64xf32> to vector<4x1x8x1x16x64xf32>
    %46 = arith.truncf %45 : vector<4x1x8x1x16x64xf32> to vector<4x1x8x1x16x64xbf16>
    %c0_32 = arith.constant 0 : index
    %c0_33 = arith.constant 0 : index
    %c0_34 = arith.constant 0 : index
    %c1_35 = arith.constant 1 : index
    %c0_36 = arith.constant 0 : index
    %c0_37 = arith.constant 0 : index
    %47 = vector.load %arg7[%c0_32, %c0_33, %c0_34, %c1_35, %c0_36, %c0_37] : memref<4x1x8x2x16x64xbf16, #tpu.memory_space<vmem>>, vector<4x1x8x1x16x64xbf16>
    tpu.vector_store %arg7[%c0_32, %c0_33, %c0_34, %c1_35, %c0_36, %c0_37], %46 {strides = array<i32>} : memref<4x1x8x2x16x64xbf16, #tpu.memory_space<vmem>>, vector<4x1x8x1x16x64xbf16>,
    return
  }
  func.func @transform_0(%arg0: i32, %arg1: i32) -> (i32, i32, i32, i32) {
    %c0_i32 = arith.constant 0 : i32
    %c0_i32_0 = arith.constant 0 : i32
    %c0_i32_1 = arith.constant 0 : i32
    return %arg0, %arg1, %c0_i32, %c0_i32_0 : i32, i32, i32, i32
  }
  func.func @transform_1(%arg0: i32, %arg1: i32) -> (i32, i32, i32) {
    %c0_i32 = arith.constant 0 : i32
    %c0_i32_0 = arith.constant 0 : i32
    %c0_i32_1 = arith.constant 0 : i32
    return %arg0, %c0_i32, %c0_i32_0 : i32, i32, i32
  }
  func.func @transform_2(%arg0: i32, %arg1: i32) -> (i32, i32, i32) {
    %c0_i32 = arith.constant 0 : i32
    %c0_i32_0 = arith.constant 0 : i32
    %c0_i32_1 = arith.constant 0 : i32
    return %arg0, %c0_i32, %c0_i32_0 : i32, i32, i32
  }
  func.func @transform_3(%arg0: i32, %arg1: i32) -> (i32, i32, i32) {
    %c0_i32 = arith.constant 0 : i32
    %c0_i32_0 = arith.constant 0 : i32
    %c0_i32_1 = arith.constant 0 : i32
    %c0_i32_2 = arith.constant 0 : i32
    return %c0_i32, %c0_i32_0, %c0_i32_1 : i32, i32, i32
  }
  func.func @transform_4(%arg0: i32, %arg1: i32) -> (i32, i32, i32) {
    %c0_i32 = arith.constant 0 : i32
    %c0_i32_0 = arith.constant 0 : i32
    %c0_i32_1 = arith.constant 0 : i32
    %c0_i32_2 = arith.constant 0 : i32
    return %c0_i32, %c0_i32_0, %c0_i32_1 : i32, i32, i32
  }
  func.func @transform_5(%arg0: i32, %arg1: i32) -> (i32, i32, i32, i32, i32, i32) {
    %c0_i32 = arith.constant 0 : i32
    %c0_i32_0 = arith.constant 0 : i32
    %c0_i32_1 = arith.constant 0 : i32
    %c0_i32_2 = arith.constant 0 : i32
    %c0_i32_3 = arith.constant 0 : i32
    return %arg0, %c0_i32, %arg1, %c0_i32_0, %c0_i32_1, %c0_i32_2 : i32, i32, i32, i32, i32, i32
  }
}

</mosaic_0001>

<bundles_post_ra>
// kernel: tpu_custom_call.1
= control target key start
LH: loop header
LB: loop body
LE: loop exit
PB: predicated region body
PF: predicated region fallthrough
CT: control target
= control target key end

     0   :  { %10 = vsyncpa [#allocation3], 0  ;;  %s5506_s0 = inlined_call_operand.hbm [shape: bf16[4,16,16,128], index: 0, kind: input, shape index: {}]   ;;  %s5507_s1 = inlined_call_operand.vmem [shape: f32[4,1,128], index: 1, kind: input, shape index: {}]   ;;  %s5508_s2 = inlined_call_operand.vmem [shape: f32[4,1,128], index: 2, kind: input, shape index: {}]   ;;  %s5509_s3 = inlined_call_operand.vmem [shape: bf16[2,128,64], index: 3, kind: input, shape index: {}]   ;;  %s5510_s4 = inlined_call_operand.vmem [shape: f32[2,1,64], index: 4, kind: input, shape index: {}]   ;;  %s5511_s5 = inlined_call_operand.hbm [shape: bf16[4,1,16,2,16,64], index: 5, kind: output, shape index: {}]  }
   0x1   :  { %12 = vsyncpa [#allocation3 + $0x1], 0 }
   0x2   :  { %13 = vsyncpa [#allocation4], 0 }
   0x3   :  { %15 = vsyncpa [#allocation4 + $0x1], 0  ;;  %s4015_s18 = smov 0   ;;  %s4017_s19 = smov 0  }
   0x4   :  { %s4019_s20 = smov 0   ;;  %s4021_s21 = smov 0  }
   0x5   :  { %s4023_s22 = smov 0   ;;  %s4025_s23 = smov 0  }
   0x6 LB: > { %s2902_s24 = sadd.s32 4294967295, %s3970_s23   ;;  %s2903_s25 = sadd.s32 4294967294, %s3970_s23   ;;  %s3970_s23 = sphi %s4025_s23, %s21_s23   ;;  %s3966_s22 = sphi %s4023_s22, %s5664_s22   ;;  %s3962_s21 = sphi %s4021_s21, %s5663_s21   ;;  %s3958_s20 = sphi %s4019_s20, %s5662_s20   ;;  %s3954_s19 = sphi %s4017_s19, %s5661_s19   ;;  %s3950_s18 = sphi %s4015_s18, %s5660_s18  }
   0x7   : > { %s30_s26 = sadd.s32 1, %s3966_s22  ;;  %s42_s27 = sadd.s32 1, %s3958_s20 }
   0x8   : > { %p31_p0 = scmp.ge.s32.totalorder %s30_s26, 2  ;;  %p49_p1 = scmp.ne.s32.totalorder %s3958_s20, %s3954_s19 }
   0x9   : > { %p50_p2 = scmp.eq.s32.totalorder %s3970_s23, 0  ;;  %p55_p3 = scmp.ne.s32.totalorder %s3954_s19, %s3950_s18 }
   0xa   : > { %s5666_s26 = smov (%p31_p0, %s30_s26), 0  ;;  %p56_p5 = scmp.eq.s32.totalorder %s2902_s24, 0 }
   0xb   : > { %5574 = sst [smem:[#allocation13_spill]] %s5666_s26  ;;  %p4056_p4 = por %p50_p2, %p49_p1 }
   0xc   : > { %s38_s29 = ssub.s32 %s3966_s22, %s5666_s26  ;;  %p175_p6 = scmp.eq.s32.totalorder %s2902_s24, 1 }
   0xd   : > { %p40_p7 = scmp.eq.s32.totalorder %s38_s29, 0  ;;  %p4062_p8 = por %p56_p5, %p55_p3 }
   0xe   : > { %p4066_p9 = por %p175_p6, %p49_p1  ;;  %p181_p10 = scmp.eq.s32.totalorder %s2903_s25, 1 }
   0xf   : > { %s4071_s7 = scalar_select %p40_p7, %s3958_s20, %s42_s27  }
  0x10   : > { %p4073_p11 = por %p181_p10, %p55_p3  ;;  %p2907_p12 = scmp.ge.s32.totalorder %s3970_s23, 2 }
  0x12   : > { %219 = sbr.rel (%p2907_p12) target bundleno = 38 (0x26), region = 32 }
  0x19   : > { %s223_s9 = sand.u32 1, %s3958_s20   ;;  %s3159_s10 = sshll.u32 %s3966_s22, 10 }
  0x1a   : > { %s2908_s11 = sshll.u32 %s223_s9, 8  ;;  %s237_s14 = scalar_lea.hbm %s5506_s0, %s3159_s10 }
  0x1b   : > { %s3689_s15 = scalar_select %p4056_p4, [#allocation0], [#allocation10] }
  0x1c   : > { %s227_s16 = scalar_lea.vmem [#allocation2], %s2908_s11  ;;  %s3972_s25 = smov 2048  }
  0x1d   : > { %s250_s17 = sshll.u32 %s227_s16, 4  ;;  %s242_s24 = sld [smem:[%s3689_s15]]   ;;  %s251_s17 = int_to_ptr.vmem [resolvable:$true] %s250_s17 }
  0x1e   : > { %3690 = sst [smem:[#allocation7]] (%p4056_p4), %s3972_s25  ;;  %s3973_s27 = smov 1024  }
  0x1f   : > { %3691 = sst [smem:[#allocation7 + $0x1]] (%p4056_p4), %s3973_s27  ;;  %s3974_s29 = smov 16  }
  0x20   : > { %3692 = sst [smem:[#allocation7 + $0x2]] (%p4056_p4), %s3974_s29  ;;  %s3975_s26 = smov 64  }
  0x21   : > { %3693 = sst [smem:[#allocation7 + $0x3]] (%p4056_p4), %s3975_s26  ;;  %s3976_s11 = smov 4  }
  0x22   : > { %3694 = sst [smem:[#allocation7 + $0x4]] (%p4056_p4), %s3975_s26  ;;  %s224_s13 = scalar_lea.sflag [#allocation3], %s223_s9 }
  0x23   : > { %s2912_s10 = sshll.u32 %s242_s24, 26  ;;  %3695 = sst [smem:[#allocation7 + $0x5]] (%p4056_p4), %s3976_s11 }
  0x24   : > { %s2913_s12 = sadd.s32 134217728, %s2912_s10  ;;  %s3977_s15 = smov [#allocation6]  }
  0x25   : > { %3696 = dma.general (%p4056_p4), %s237_s14, 4096, %s251_s17, %s224_s13, %s3977_s15, [#allocation7], %s2913_s12, 0  }
  0x26 PF: > { %p2914_p13 = scmp.ge.s32.totalorder %s3970_s23, 1  ;;  %p271_p0 = scmp.lt.s32.totalorder %s3970_s23, 3 }
  0x28   : > { %p272_p1 = pnand %p2914_p13, %p271_p0 }
  0x2a   : > { %275 = sbr.rel (%p272_p1) target bundleno = 802 (0x322), region = 40 }
  0x31   : > { %s4104_s16 = sand.u32 1, %s3954_s19  }
  0x32   : > { %s2915_s26 = sshll.u32 %s4104_s16, 8  ;;  %s278_s24 = scalar_lea.sflag [#allocation3], %s4104_s16 }
  0x33   : > { %s4108_s25 = scalar_lea.vmem [#allocation2], %s2915_s26 }
  0x34   : > { %3941 = dma.done.wait (%p4062_p8), %s278_s24, 4096  }
  0x35   : > { %3943 = vsyncadd (%p4062_p8), %s278_s24, 4294963200  ;;  %v4115_v0 = vld [vmem:[%s4108_s25] sm:$0xff]   ;;  %v4118_v1 = vld [vmem:[%s4108_s25 + $0x8] sm:$0xff]   ;;  %s2916_s11 = sshll.u32 %s4104_s16, 9  ;;  %vm1996_vm0 = vcmask 519168   ;;  %s2745_s13 = scalar_lea.sflag [#allocation4], %s4104_s16 }
  0x36   : > { %v3292_v2 = vunpack.c.l.bf16 %v4115_v0  ;;  %v3296_v3 = vunpack.c.l.bf16 %v4118_v1  ;;  %v3293_v4 = vunpack.c.h.bf16 %v4115_v0  ;;  %v3297_v5 = vunpack.c.h.bf16 %v4118_v1  ;;  %v4129_v6 = vld [vmem:[%s4108_s25 + $0x10] sm:$0xff]   ;;  %v4138_v9 = vld [vmem:[%s4108_s25 + $0x18] sm:$0xff]   ;;  %v4141_v10 = vld [vmem:[%s4108_s25 + $0x20] sm:$0xff]   ;;  %s5085_s12 = scalar_lea.vmem [#allocation5], %s2916_s11 }
  0x37   : > { %v3300_v7 = vunpack.c.l.bf16 %v4129_v6  ;;  %v3301_v8 = vunpack.c.h.bf16 %v4129_v6  ;;  %v3304_v11 = vunpack.c.l.bf16 %v4138_v9  ;;  %v3305_v12 = vunpack.c.h.bf16 %v4138_v9  ;;  %v4150_v13 = vld [vmem:[%s4108_s25 + $0x28] sm:$0xff]   ;;  %v4165_v18 = vld [vmem:[%s4108_s25 + $0x30] sm:$0xff]   ;;  %v4174_v21 = vld [vmem:[%s4108_s25 + $0x38] sm:$0xff]  }
  0x38   : > { %459 = vadd.xlane.f32.xlu0 %v3292_v2  ;;  %463 = vadd.xlane.f32.xlu1 %v3296_v3  ;;  %v3308_v14 = vunpack.c.l.bf16 %v4141_v10  ;;  %v3309_v15 = vunpack.c.h.bf16 %v4141_v10  ;;  %v3312_v16 = vunpack.c.l.bf16 %v4150_v13  ;;  %v3313_v17 = vunpack.c.h.bf16 %v4150_v13  ;;  %v4183_v24 = vld [vmem:[%s4108_s25 + $0x40] sm:$0xff]   ;;  %v4192_v27 = vld [vmem:[%s4108_s25 + $0x48] sm:$0xff]   ;;  %v4201_v30 = vld [vmem:[%s4108_s25 + $0x50] sm:$0xff]  }
  0x39   : > { %v3316_v19 = vunpack.c.l.bf16 %v4165_v18  ;;  %v3317_v20 = vunpack.c.h.bf16 %v4165_v18  ;;  %v3320_v22 = vunpack.c.l.bf16 %v4174_v21  ;;  %v3321_v23 = vunpack.c.h.bf16 %v4174_v21  ;;  %v4210_v33 = vld [vmem:[%s4108_s25 + $0x58] sm:$0xff]   ;;  %v4219_v36 = vld [vmem:[%s4108_s25 + $0x60] sm:$0xff]   ;;  %v4228_v39 = vld [vmem:[%s4108_s25 + $0x68] sm:$0xff]  }
  0x3a   : > { %v3324_v25 = vunpack.c.l.bf16 %v4183_v24  ;;  %v3325_v26 = vunpack.c.h.bf16 %v4183_v24  ;;  %v3328_v28 = vunpack.c.l.bf16 %v4192_v27  ;;  %v3329_v29 = vunpack.c.h.bf16 %v4192_v27  ;;  %v4237_v42 = vld [vmem:[%s4108_s25 + $0x70] sm:$0xff]   ;;  %v4246_v45 = vld [vmem:[%s4108_s25 + $0x78] sm:$0xff]   ;;  %v4255_v48 = vld [vmem:[%s4108_s25 + $0x80] sm:$0xff]  }
  0x3b   : > { %v3332_v31 = vunpack.c.l.bf16 %v4201_v30  ;;  %v3333_v32 = vunpack.c.h.bf16 %v4201_v30  ;;  %v5549_v34 = vunpack.c.l.bf16 %v4210_v33  ;;  %v5547_v35 = vunpack.c.h.bf16 %v4210_v33  ;;  %v4264_v51 = vld [vmem:[%s4108_s25 + $0x88] sm:$0xff]   ;;  %v4273_v54 = vld [vmem:[%s4108_s25 + $0x90] sm:$0xff]   ;;  %v4282_v57 = vld [vmem:[%s4108_s25 + $0x98] sm:$0xff]  }
  0x3c   : > { %461 = vadd.xlane.f32.xlu0 %v3293_v4  ;;  %465 = vadd.xlane.f32.xlu1 %v3297_v5  ;;  %v5546_v37 = vunpack.c.l.bf16 %v4219_v36  ;;  %v5545_v38 = vunpack.c.h.bf16 %v4219_v36  ;;  %v5542_v40 = vunpack.c.l.bf16 %v4228_v39  ;;  %v5541_v41 = vunpack.c.h.bf16 %v4228_v39  ;;  %v4291_v60 = vld [vmem:[%s4108_s25 + $0xa0] sm:$0xff]   ;;  %v4300_v63 = vld [vmem:[%s4108_s25 + $0xa8] sm:$0xff]  }
  0x3d   : > { %v5538_v43 = vunpack.c.l.bf16 %v4237_v42  ;;  %v5535_v44 = vunpack.c.h.bf16 %v4237_v42  ;;  %v5532_v46 = vunpack.c.l.bf16 %v4246_v45  ;;  %v5530_v47 = vunpack.c.h.bf16 %v4246_v45 }
  0x3e   : > { %v5527_v49 = vunpack.c.l.bf16 %v4255_v48  ;;  %v5524_v50 = vunpack.c.h.bf16 %v4255_v48  ;;  %v5521_v52 = vunpack.c.l.bf16 %v4264_v51  ;;  %v5518_v53 = vunpack.c.h.bf16 %v4264_v51 }
  0x3f   : > { %v5515_v55 = vunpack.c.l.bf16 %v4273_v54  ;;  %v5513_v56 = vunpack.c.h.bf16 %v4273_v54  ;;  %v5514_v58 = vunpack.c.l.bf16 %v4282_v57  ;;  %v5516_v59 = vunpack.c.h.bf16 %v4282_v57 }
  0x40   : > { %467 = vadd.xlane.f32.xlu0 %v3300_v7  ;;  %469 = vadd.xlane.f32.xlu1 %v3301_v8  ;;  %v5517_v61 = vunpack.c.l.bf16 %v4291_v60  ;;  %v5519_v62 = vunpack.c.h.bf16 %v4291_v60 }
  0x44   : > { %471 = vadd.xlane.f32.xlu0 %v3304_v11  ;;  %473 = vadd.xlane.f32.xlu1 %v3305_v12 }
  0x48   : > { %475 = vadd.xlane.f32.xlu0 %v3308_v14  ;;  %477 = vadd.xlane.f32.xlu1 %v3309_v15 }
  0x4c   : > { %479 = vadd.xlane.f32.xlu0 %v3312_v16  ;;  %481 = vadd.xlane.f32.xlu1 %v3313_v17 }
  0x50   : > { %483 = vadd.xlane.f32.xlu0 %v3316_v19  ;;  %485 = vadd.xlane.f32.xlu1 %v3317_v20 }
  0x54   : > { %487 = vadd.xlane.f32.xlu0 %v3320_v22  ;;  %489 = vadd.xlane.f32.xlu1 %v3321_v23 }
  0x58   : > { %491 = vadd.xlane.f32.xlu0 %v3324_v25  ;;  %493 = vadd.xlane.f32.xlu1 %v3325_v26 }
  0x5c   : > { %495 = vadd.xlane.f32.xlu0 %v3328_v28  ;;  %497 = vadd.xlane.f32.xlu1 %v3329_v29 }
  0x60   : > { %499 = vadd.xlane.f32.xlu0 %v3332_v31  ;;  %501 = vadd.xlane.f32.xlu1 %v3333_v32 }
  0x64   : > { %503 = vadd.xlane.f32.xlu0 %v5549_v34  ;;  %505 = vadd.xlane.f32.xlu1 %v5547_v35 }
  0x68   : > { %507 = vadd.xlane.f32.xlu0 %v5546_v37  ;;  %509 = vadd.xlane.f32.xlu1 %v5545_v38 }
  0x6c   : > { %511 = vadd.xlane.f32.xlu0 %v5542_v40  ;;  %513 = vadd.xlane.f32.xlu1 %v5541_v41 }
  0x70   : > { %515 = vadd.xlane.f32.xlu0 %v5538_v43  ;;  %517 = vadd.xlane.f32.xlu1 %v5535_v44 }
  0x74   : > { %519 = vadd.xlane.f32.xlu0 %v5532_v46  ;;  %521 = vadd.xlane.f32.xlu1 %v5530_v47  ;;  %v4354_v47 = vld [vmem:[%s4108_s25 + $0xd8] sm:$0xff]  }
  0x75   : > { %v5539_v46 = vunpack.c.h.bf16 %v4354_v47 }
  0x78   : > { %523 = vadd.xlane.f32.xlu0 %v5527_v49  ;;  %525 = vadd.xlane.f32.xlu1 %v5524_v50  ;;  %v4336_v50 = vld [vmem:[%s4108_s25 + $0xc8] sm:$0xff]   ;;  %v4345_v49 = vld [vmem:[%s4108_s25 + $0xd0] sm:$0xff]  }
  0x7c   : > { %527 = vadd.xlane.f32.xlu0 %v5521_v52  ;;  %529 = vadd.xlane.f32.xlu1 %v5518_v53  ;;  %v4318_v53 = vld [vmem:[%s4108_s25 + $0xb8] sm:$0xff]   ;;  %v4327_v52 = vld [vmem:[%s4108_s25 + $0xc0] sm:$0xff]  }
  0x80   : > { %531 = vadd.xlane.f32.xlu0 %v5515_v55  ;;  %533 = vadd.xlane.f32.xlu1 %v5513_v56  ;;  %v5520_v56 = vunpack.c.l.bf16 %v4300_v63  ;;  %v4309_v55 = vld [vmem:[%s4108_s25 + $0xb0] sm:$0xff]  }
  0x84   : > { %535 = vadd.xlane.f32.xlu0 %v5514_v58  ;;  %537 = vadd.xlane.f32.xlu1 %v5516_v59  ;;  %v5522_v58 = vunpack.c.h.bf16 %v4300_v63  ;;  %v5523_v59 = vunpack.c.l.bf16 %v4309_v55 }
  0x88   : > { %539 = vadd.xlane.f32.xlu0 %v5517_v61  ;;  %541 = vadd.xlane.f32.xlu1 %v5519_v62  ;;  %v5525_v61 = vunpack.c.h.bf16 %v4309_v55  ;;  %v5526_v62 = vunpack.c.l.bf16 %v4318_v53 }
  0x8c   : > { %543 = vadd.xlane.f32.xlu0 %v5520_v56  ;;  %545 = vadd.xlane.f32.xlu1 %v5522_v58  ;;  %v5528_v56 = vunpack.c.h.bf16 %v4318_v53  ;;  %v5529_v58 = vunpack.c.l.bf16 %v4327_v52 }
  0x90   : > { %547 = vadd.xlane.f32.xlu0 %v5523_v59  ;;  %549 = vadd.xlane.f32.xlu1 %v5525_v61  ;;  %v5531_v59 = vunpack.c.h.bf16 %v4327_v52  ;;  %v5533_v61 = vunpack.c.l.bf16 %v4336_v50 }
  0x94   : > { %551 = vadd.xlane.f32.xlu0 %v5526_v62  ;;  %553 = vadd.xlane.f32.xlu1 %v5528_v56  ;;  %v5534_v62 = vunpack.c.h.bf16 %v4336_v50  ;;  %v5536_v56 = vunpack.c.l.bf16 %v4345_v49 }
  0x98   : > { %555 = vadd.xlane.f32.xlu0 %v5529_v58  ;;  %557 = vadd.xlane.f32.xlu1 %v5531_v59  ;;  %v5537_v58 = vunpack.c.h.bf16 %v4345_v49  ;;  %v5540_v59 = vunpack.c.l.bf16 %v4354_v47 }
  0x9c   : > { %559 = vadd.xlane.f32.xlu0 %v5533_v61  ;;  %561 = vadd.xlane.f32.xlu1 %v5534_v62  ;;  %v4363_v61 = vld [vmem:[%s4108_s25 + $0xe0] sm:$0xff]  }
  0x9d   : > { %v5543_v62 = vunpack.c.l.bf16 %v4363_v61  ;;  %v5544_v44 = vunpack.c.h.bf16 %v4363_v61 }
  0xa0   : > { %563 = vadd.xlane.f32.xlu0 %v5536_v56  ;;  %565 = vadd.xlane.f32.xlu1 %v5537_v58  ;;  %v4372_v56 = vld [vmem:[%s4108_s25 + $0xe8] sm:$0xff]  }
  0xa1   : > { %v5548_v58 = vunpack.c.l.bf16 %v4372_v56  ;;  %v5553_v43 = vunpack.c.h.bf16 %v4372_v56 }
  0xa4   : > { %567 = vadd.xlane.f32.xlu0 %v5540_v59  ;;  %569 = vadd.xlane.f32.xlu1 %v5539_v46 }
  0xa8   : > { %571 = vadd.xlane.f32.xlu0 %v5543_v62  ;;  %573 = vadd.xlane.f32.xlu1 %v5544_v44 }
  0xac   : > { %575 = vadd.xlane.f32.xlu0 %v5548_v58  ;;  %577 = vadd.xlane.f32.xlu1 %v5553_v43 }
  0xc5   : > { %v460_v46 = vpop.xlane.xlu0 %459  ;;  %v464_v59 = vpop.xlane.xlu1 %463 }
  0xc6   : > { %v588_v41 = vmul.f32 0.0078125, %v460_v46  ;;  %v590_v40 = vmul.f32 0.0078125, %v464_v59 }
  0xc8   : > { %v4386_v62 = vsub.f32 %v3292_v2, %v588_v41  ;;  %v4390_v44 = vsub.f32 %v3296_v3, %v590_v40  ;;  %v3772_v3 = vld [vmem:[%s5509_s3] sm:$0xff]  }
  0xc9   : > { %v462_v38 = vpop.xlane.xlu0 %461  ;;  %v466_v37 = vpop.xlane.xlu1 %465  ;;  %3529 = vmatprep.subr.bf16.mxu0 %v3772_v3 }
  0xca   : > { %v589_v35 = vmul.f32 0.0078125, %v462_v38  ;;  %v716_v58 = vmul.f32 %v4386_v62, %v4386_v62  ;;  %v591_v34 = vmul.f32 0.0078125, %v466_v37  ;;  %v718_v46 = vmul.f32 %v4390_v44, %v4390_v44  ;;  %v3773_v37 = vld [vmem:[%s5509_s3 + $0x40] sm:$0xff]   ;;  %3530 = vmatpush3.bf16.msra.mxu0 %v3772_v3 }
  0xcb   : > { %3609 = vmatprep.subr.bf16.mxu1 %v3773_v37 }
  0xcc   : > { %780 = vadd.xlane.f32.xlu0 %v716_v58  ;;  %v4398_v59 = vsub.f32 %v3293_v4, %v589_v35  ;;  %v4402_v2 = vsub.f32 %v3297_v5, %v591_v34  ;;  %3610 = vmatpush3.bf16.msra.mxu1 %v3773_v37 }
  0xcd   : > { %v468_v38 = vpop.xlane.xlu0 %467  ;;  %v470_v40 = vpop.xlane.xlu1 %469 }
  0xce   : > { %v592_v41 = vmul.f32 0.0078125, %v468_v38  ;;  %v717_v0 = vmul.f32 %v4398_v59, %v4398_v59  ;;  %v593_v4 = vmul.f32 0.0078125, %v470_v40  ;;  %v719_v1 = vmul.f32 %v4402_v2, %v4402_v2 }
  0xd0   : > { %784 = vadd.xlane.f32.xlu0 %v718_v46  ;;  %782 = vadd.xlane.f32.xlu1 %v717_v0  ;;  %v4416_v5 = vsub.f32 %v3300_v7, %v592_v41  ;;  %v4420_v34 = vsub.f32 %v3301_v8, %v593_v4 }
  0xd1   : > { %v472_v35 = vpop.xlane.xlu0 %471  ;;  %v474_v58 = vpop.xlane.xlu1 %473 }
  0xd2   : > { %v594_v38 = vmul.f32 0.0078125, %v472_v35  ;;  %v720_v3 = vmul.f32 %v4416_v5, %v4416_v5  ;;  %v595_v37 = vmul.f32 0.0078125, %v474_v58  ;;  %v721_v46 = vmul.f32 %v4420_v34, %v4420_v34 }
  0xd4   : > { %786 = vadd.xlane.f32.xlu1 %v719_v1  ;;  %788 = vadd.xlane.f32.xlu0 %v720_v3  ;;  %v4428_v7 = vsub.f32 %v3304_v11, %v594_v38  ;;  %v4432_v6 = vsub.f32 %v3305_v12, %v595_v37  ;;  %v3774_v37 = vld [vmem:[%s5509_s3 + $0x8] sm:$0xff]  }
  0xd5   : > { %v476_v8 = vpop.xlane.xlu0 %475  ;;  %v478_v40 = vpop.xlane.xlu1 %477  ;;  %3531 = vmatprep.subr.bf16.mxu0 %v3774_v37 }
  0xd6   : > { %v596_v41 = vmul.f32 0.0078125, %v476_v8  ;;  %v722_v0 = vmul.f32 %v4428_v7, %v4428_v7  ;;  %v597_v4 = vmul.f32 0.0078125, %v478_v40  ;;  %v723_v1 = vmul.f32 %v4432_v6, %v4432_v6  ;;  %3532 = vmatpush3.bf16.msra.mxu0 %v3774_v37 }
  0xd8   : > { %790 = vadd.xlane.f32.xlu1 %v721_v46  ;;  %792 = vadd.xlane.f32.xlu0 %v722_v0  ;;  %v4440_v11 = vsub.f32 %v3308_v14, %v596_v41  ;;  %v4444_v9 = vsub.f32 %v3309_v15, %v597_v4  ;;  %v3775_v14 = vld [vmem:[%s5509_s3 + $0x48] sm:$0xff]  }
  0xd9   : > { %v480_v12 = vpop.xlane.xlu0 %479  ;;  %v482_v35 = vpop.xlane.xlu1 %481  ;;  %3611 = vmatprep.subr.bf16.mxu1 %v3775_v14 }
  0xda   : > { %v598_v58 = vmul.f32 0.0078125, %v480_v12  ;;  %v724_v38 = vmul.f32 %v4440_v11, %v4440_v11  ;;  %v599_v3 = vmul.f32 0.0078125, %v482_v35  ;;  %v725_v10 = vmul.f32 %v4444_v9, %v4444_v9  ;;  %3612 = vmatpush3.bf16.msra.mxu1 %v3775_v14  ;;  %v3777_v12 = vld [vmem:[%s5509_s3 + $0x50] sm:$0xff]   ;;  %v3778_v14 = vld [vmem:[%s5509_s3 + $0x18] sm:$0xff]  }
  0xdb   : > { %3613 = vmatprep.subr.bf16.mxu1 %v3777_v12 }
  0xdc   : > { %794 = vadd.xlane.f32.xlu1 %v723_v1  ;;  %796 = vadd.xlane.f32.xlu0 %v724_v38  ;;  %v4458_v15 = vsub.f32 %v3312_v16, %v598_v58  ;;  %v4462_v46 = vsub.f32 %v3313_v17, %v599_v3  ;;  %v3776_v1 = vld [vmem:[%s5509_s3 + $0x10] sm:$0xff]  }
  0xdd   : > { %v484_v8 = vpop.xlane.xlu0 %483  ;;  %v486_v40 = vpop.xlane.xlu1 %485  ;;  %3533 = vmatprep.subr.bf16.mxu0 %v3776_v1 }
  0xde   : > { %v600_v41 = vmul.f32 0.0078125, %v484_v8  ;;  %v726_v0 = vmul.f32 %v4458_v15, %v4458_v15  ;;  %v601_v4 = vmul.f32 0.0078125, %v486_v40  ;;  %v727_v16 = vmul.f32 %v4462_v46, %v4462_v46  ;;  %3534 = vmatpush3.bf16.msra.mxu0 %v3776_v1  ;;  %3614 = vmatpush3.bf16.msra.mxu1 %v3777_v12  ;;  %v3781_v1 = vld [vmem:[%s5509_s3 + $0x60] sm:$0xff]  }
  0xdf   : > { %3535 = vmatprep.subr.bf16.mxu0 %v3778_v14 }
  0xe0   : > { %798 = vadd.xlane.f32.xlu1 %v725_v10  ;;  %800 = vadd.xlane.f32.xlu0 %v726_v0  ;;  %v4470_v13 = vsub.f32 %v3316_v19, %v600_v41  ;;  %v4474_v17 = vsub.f32 %v3317_v20, %v601_v4  ;;  %v3779_v10 = vld [vmem:[%s5509_s3 + $0x58] sm:$0xff]  }
  0xe1   : > { %v488_v35 = vpop.xlane.xlu0 %487  ;;  %v490_v58 = vpop.xlane.xlu1 %489  ;;  %3615 = vmatprep.subr.bf16.mxu1 %v3779_v10 }
  0xe2   : > { %v602_v38 = vmul.f32 0.0078125, %v488_v35  ;;  %v728_v3 = vmul.f32 %v4470_v13, %v4470_v13  ;;  %v603_v19 = vmul.f32 0.0078125, %v490_v58  ;;  %v729_v18 = vmul.f32 %v4474_v17, %v4474_v17  ;;  %3536 = vmatpush3.bf16.msra.mxu0 %v3778_v14  ;;  %3616 = vmatpush3.bf16.msra.mxu1 %v3779_v10 }
  0xe3   : > { %3617 = vmatprep.subr.bf16.mxu1 %v3781_v1 }
  0xe4   : > { %802 = vadd.xlane.f32.xlu1 %v727_v16  ;;  %804 = vadd.xlane.f32.xlu0 %v728_v3  ;;  %v4488_v20 = vsub.f32 %v3320_v22, %v602_v38  ;;  %v4492_v37 = vsub.f32 %v3321_v23, %v603_v19  ;;  %v3780_v16 = vld [vmem:[%s5509_s3 + $0x20] sm:$0xff]   ;;  %v3782_v19 = vld [vmem:[%s5509_s3 + $0x28] sm:$0xff]  }
  0xe5   : > { %v492_v8 = vpop.xlane.xlu0 %491  ;;  %v494_v40 = vpop.xlane.xlu1 %493  ;;  %3537 = vmatprep.subr.bf16.mxu0 %v3780_v16 }
  0xe6   : > { %v604_v41 = vmul.f32 0.0078125, %v492_v8  ;;  %v730_v0 = vmul.f32 %v4488_v20, %v4488_v20  ;;  %v605_v22 = vmul.f32 0.0078125, %v494_v40  ;;  %v731_v21 = vmul.f32 %v4492_v37, %v4492_v37  ;;  %3538 = vmatpush3.bf16.msra.mxu0 %v3780_v16  ;;  %3618 = vmatpush3.bf16.msra.mxu1 %v3781_v1 }
  0xe7   : > { %3539 = vmatprep.subr.bf16.mxu0 %v3782_v19 }
  0xe8   : > { %806 = vadd.xlane.f32.xlu1 %v729_v18  ;;  %808 = vadd.xlane.f32.xlu0 %v730_v0  ;;  %v4506_v23 = vsub.f32 %v3324_v25, %v604_v41  ;;  %v4510_v4 = vsub.f32 %v3325_v26, %v605_v22  ;;  %v3783_v18 = vld [vmem:[%s5509_s3 + $0x68] sm:$0xff]   ;;  %v3784_v0 = vld [vmem:[%s5509_s3 + $0x30] sm:$0xff]  }
  0xe9   : > { %v496_v12 = vpop.xlane.xlu0 %495  ;;  %v498_v35 = vpop.xlane.xlu1 %497  ;;  %3619 = vmatprep.subr.bf16.mxu1 %v3783_v18  ;;  %v3785_v22 = vld [vmem:[%s5509_s3 + $0x70] sm:$0xff]  }
  0xea   : > { %v606_v58 = vmul.f32 0.0078125, %v496_v12  ;;  %v732_v38 = vmul.f32 %v4506_v23, %v4506_v23  ;;  %v607_v25 = vmul.f32 0.0078125, %v498_v35  ;;  %v733_v24 = vmul.f32 %v4510_v4, %v4510_v4  ;;  %3540 = vmatpush3.bf16.msra.mxu0 %v3782_v19  ;;  %3620 = vmatpush3.bf16.msra.mxu1 %v3783_v18  ;;  %v4573_v19 = vld [vmem:[%s4108_s25 + $0xf0] sm:$0xff]  }
  0xeb   : > { %3541 = vmatprep.subr.bf16.mxu0 %v3784_v0  ;;  %3621 = vmatprep.subr.bf16.mxu1 %v3785_v22 }
  0xec   : > { %810 = vadd.xlane.f32.xlu1 %v731_v21  ;;  %812 = vadd.xlane.f32.xlu0 %v732_v38  ;;  %v4524_v26 = vsub.f32 %v3328_v28, %v606_v58  ;;  %v4528_v3 = vsub.f32 %v3329_v29, %v607_v25  ;;  %v5580_v58 = vunpack.c.h.bf16 %v4210_v33  ;;  %v3786_v25 = vld [vmem:[%s5509_s3 + $0x38] sm:$0xff]  }
  0xed   : > { %v500_v14 = vpop.xlane.xlu0 %499  ;;  %v502_v10 = vpop.xlane.xlu1 %501 }
  0xee   : > { %v608_v8 = vmul.f32 0.0078125, %v500_v14  ;;  %v734_v40 = vmul.f32 %v4524_v26, %v4524_v26  ;;  %v609_v28 = vmul.f32 0.0078125, %v502_v10  ;;  %v735_v27 = vmul.f32 %v4528_v3, %v4528_v3  ;;  %3542 = vmatpush3.bf16.msra.mxu0 %v3784_v0  ;;  %3622 = vmatpush3.bf16.msra.mxu1 %v3785_v22 }
  0xef   : > { %3543 = vmatprep.subr.bf16.mxu0 %v3786_v25 }
  0xf0   : > { %814 = vadd.xlane.f32.xlu1 %v733_v24  ;;  %816 = vadd.xlane.f32.xlu0 %v734_v40  ;;  %v4542_v29 = vsub.f32 %v3332_v31, %v608_v8  ;;  %v4546_v41 = vsub.f32 %v3333_v32, %v609_v28  ;;  %v5579_v32 = vunpack.c.l.bf16 %v4210_v33  ;;  %v3787_v24 = vld [vmem:[%s5509_s3 + $0x78] sm:$0xff]   ;;  %v5552_v8 = vunpack.c.l.bf16 %v4573_v19 }
  0xf1   : > { %v504_v21 = vpop.xlane.xlu0 %503  ;;  %v506_v16 = vpop.xlane.xlu1 %505  ;;  %3623 = vmatprep.subr.bf16.mxu1 %v3787_v24  ;;  %v4581_v28 = vld [vmem:[%s4108_s25 + $0xf8] sm:$0xff]  }
  0xf2   : > { %v610_v1 = vmul.f32 0.0078125, %v504_v21  ;;  %v736_v31 = vmul.f32 %v4542_v29, %v4542_v29  ;;  %v611_v12 = vmul.f32 0.0078125, %v506_v16  ;;  %v737_v30 = vmul.f32 %v4546_v41, %v4546_v41  ;;  %3544 = vmatpush3.bf16.msra.mxu0 %v3786_v25  ;;  %3624 = vmatpush3.bf16.msra.mxu1 %v3787_v24 }
  0xf3   : > { %v5551_v21 = vunpack.c.h.bf16 %v4573_v19  ;;  %v5550_v16 = vunpack.c.l.bf16 %v4581_v28  ;;  %v5582_v25 = vunpack.c.h.bf16 %v4219_v36 }
  0xf4   : > { %818 = vadd.xlane.f32.xlu1 %v735_v27  ;;  %820 = vadd.xlane.f32.xlu0 %v736_v31  ;;  %v4560_v35 = vsub.f32 %v5579_v32, %v610_v1  ;;  %v4564_v38 = vsub.f32 %v5580_v58, %v611_v12  ;;  %v5581_v31 = vunpack.c.l.bf16 %v4219_v36  ;;  %v5555_v58 = vunpack.c.h.bf16 %v4581_v28 }
  0xf5   : > { %v508_v18 = vpop.xlane.xlu0 %507  ;;  %v510_v14 = vpop.xlane.xlu1 %509 }
  0xf6   : > { %v738_v10 = vmul.f32 %v4560_v35, %v4560_v35  ;;  %v739_v33 = vmul.f32 %v4564_v38, %v4564_v38  ;;  %v612_v40 = vmul.f32 0.0078125, %v508_v18  ;;  %v613_v22 = vmul.f32 0.0078125, %v510_v14 }
  0xf8   : > { %822 = vadd.xlane.f32.xlu1 %v737_v30  ;;  %824 = vadd.xlane.f32.xlu0 %v738_v10  ;;  %v4589_v12 = vsub.f32 %v5581_v31, %v612_v40  ;;  %v4594_v24 = vsub.f32 %v5582_v25, %v613_v22 }
  0xf9   : > { %v512_v27 = vpop.xlane.xlu0 %511  ;;  %v514_v0 = vpop.xlane.xlu1 %513 }
  0xfa   : > { %v614_v1 = vmul.f32 0.0078125, %v512_v27  ;;  %5583 = vst [vmem:[#allocation14_spill] sm:$0xff] %v4594_v24  ;;  %v740_v18 = vmul.f32 %v4589_v12, %v4589_v12  ;;  %v615_v14 = vmul.f32 0.0078125, %v514_v0  ;;  %v741_v36 = vmul.f32 %v4594_v24, %v4594_v24 }
  0xfb   : > { %v5585_v0 = vunpack.c.h.bf16 %v4228_v39 }
  0xfc   : > { %826 = vadd.xlane.f32.xlu1 %v739_v33  ;;  %579 = vadd.xlane.f32.xlu0 %v5552_v8  ;;  %v5584_v33 = vunpack.c.l.bf16 %v4228_v39 }
  0xfd   : > { %v516_v30 = vpop.xlane.xlu0 %515  ;;  %v518_v32 = vpop.xlane.xlu1 %517 }
  0xfe   : > { %v616_v10 = vmul.f32 0.0078125, %v516_v30  ;;  %v4604_v40 = vsub.f32 %v5584_v33, %v614_v1  ;;  %v617_v22 = vmul.f32 0.0078125, %v518_v32  ;;  %v4614_v30 = vsub.f32 %v5585_v0, %v615_v14 }
  0xff   : > { %v5586_v1 = vunpack.c.l.bf16 %v4237_v42  ;;  %v5587_v32 = vunpack.c.h.bf16 %v4237_v42 }
 0x100   : > { %581 = vadd.xlane.f32.xlu1 %v5551_v21  ;;  %583 = vadd.xlane.f32.xlu0 %v5550_v16  ;;  %v742_v25 = vmul.f32 %v4604_v40, %v4604_v40  ;;  %v743_v39 = vmul.f32 %v4614_v30, %v4614_v30 }
 0x101   : > { %v520_v27 = vpop.xlane.xlu0 %519  ;;  %v522_v31 = vpop.xlane.xlu1 %521  ;;  %v4618_v33 = vsub.f32 %v5586_v1, %v616_v10  ;;  %v4622_v24 = vsub.f32 %v5587_v32, %v617_v22 }
 0x102   : > { %v618_v16 = vmul.f32 0.0078125, %v520_v27  ;;  %v619_v43 = vmul.f32 0.0078125, %v522_v31  ;;  %v5591_v31 = vunpack.c.h.bf16 %v4246_v45 }
 0x103   : > { %5588 = vst [vmem:[#allocation15_spill] sm:$0xff] %v4622_v24  ;;  %v744_v14 = vmul.f32 %v4618_v33, %v4618_v33 }
 0x104   : > { %585 = vadd.xlane.f32.xlu1 %v5555_v58  ;;  %828 = vadd.xlane.f32.xlu0 %v740_v18  ;;  %v5589_v18 = vunpack.c.l.bf16 %v4246_v45  ;;  %v4634_v42 = vsub.f32 %v5591_v31, %v619_v43 }
 0x105   : > { %v524_v21 = vpop.xlane.xlu0 %523  ;;  %v526_v8 = vpop.xlane.xlu1 %525 }
 0x106   : > { %v4626_v27 = vsub.f32 %v5589_v18, %v618_v16  ;;  %v620_v10 = vmul.f32 0.0078125, %v524_v21  ;;  %5592 = vst [vmem:[#allocation17_spill] sm:$0xff] %v4634_v42  ;;  %v5593_v16 = vunpack.c.l.bf16 %v4255_v48  ;;  %v621_v32 = vmul.f32 0.0078125, %v526_v8 }
 0x107   : > { %v747_v43 = vmul.f32 %v4634_v42, %v4634_v42 }
 0x108   : > { %830 = vadd.xlane.f32.xlu1 %v741_v36  ;;  %832 = vadd.xlane.f32.xlu0 %v742_v25  ;;  %5590 = vst [vmem:[#allocation16_spill] sm:$0xff] %v4626_v27  ;;  %v745_v36 = vmul.f32 %v4622_v24, %v4622_v24  ;;  %v4640_v22 = vsub.f32 %v5593_v16, %v620_v10  ;;  %v5595_v10 = vunpack.c.l.bf16 %v4264_v51  ;;  %v5596_v24 = vunpack.c.h.bf16 %v4264_v51 }
 0x109   : > { %v528_v0 = vpop.xlane.xlu0 %527  ;;  %v530_v1 = vpop.xlane.xlu1 %529  ;;  %v746_v25 = vmul.f32 %v4626_v27, %v4626_v27  ;;  %v5600_v51 = vunpack.c.h.bf16 %v4273_v54 }
 0x10a   : > { %v622_v21 = vmul.f32 0.0078125, %v528_v0  ;;  %v623_v45 = vmul.f32 0.0078125, %v530_v1  ;;  %v748_v8 = vmul.f32 %v4640_v22, %v4640_v22 }
 0x10c   : > { %834 = vadd.xlane.f32.xlu1 %v743_v39  ;;  %836 = vadd.xlane.f32.xlu0 %v744_v14  ;;  %v5594_v39 = vunpack.c.h.bf16 %v4255_v48  ;;  %v4652_v31 = vsub.f32 %v5595_v10, %v622_v21  ;;  %v4658_v42 = vsub.f32 %v5596_v24, %v623_v45  ;;  %v5598_v48 = vunpack.c.l.bf16 %v4273_v54 }
 0x10d   : > { %v532_v18 = vpop.xlane.xlu0 %531  ;;  %v534_v58 = vpop.xlane.xlu1 %533 }
 0x10e   : > { %v4648_v14 = vsub.f32 %v5594_v39, %v621_v32  ;;  %v624_v0 = vmul.f32 0.0078125, %v532_v18  ;;  %5597 = vst [vmem:[#allocation18_spill] sm:$0xff] %v4658_v42  ;;  %v625_v1 = vmul.f32 0.0078125, %v534_v58  ;;  %v750_v32 = vmul.f32 %v4652_v31, %v4652_v31 }
 0x10f   : > { %v751_v58 = vmul.f32 %v4658_v42, %v4658_v42  ;;  %v5605_v42 = vunpack.c.h.bf16 %v4291_v60 }
 0x110   : > { %838 = vadd.xlane.f32.xlu1 %v745_v36  ;;  %840 = vadd.xlane.f32.xlu0 %v746_v25  ;;  %v4662_v36 = vsub.f32 %v5598_v48, %v624_v0  ;;  %v749_v25 = vmul.f32 %v4648_v14, %v4648_v14  ;;  %v4670_v24 = vsub.f32 %v5600_v51, %v625_v1 }
 0x111   : > { %v536_v16 = vpop.xlane.xlu0 %535  ;;  %v538_v27 = vpop.xlane.xlu1 %537 }
 0x112   : > { %5599 = vst [vmem:[#allocation19_spill] sm:$0xff] %v4662_v36  ;;  %v626_v21 = vmul.f32 0.0078125, %v536_v16  ;;  %5601 = vst [vmem:[#allocation20_spill] sm:$0xff] %v4670_v24  ;;  %v752_v10 = vmul.f32 %v4662_v36, %v4662_v36  ;;  %v753_v54 = vmul.f32 %v4670_v24, %v4670_v24 }
 0x114   : > { %842 = vadd.xlane.f32.xlu1 %v747_v43  ;;  %844 = vadd.xlane.f32.xlu0 %v748_v8  ;;  %v5602_v43 = vunpack.c.l.bf16 %v4282_v57  ;;  %v627_v8 = vmul.f32 0.0078125, %v538_v27 }
 0x115   : > { %v540_v18 = vpop.xlane.xlu0 %539  ;;  %v542_v39 = vpop.xlane.xlu1 %541 }
 0x116   : > { %v4676_v45 = vsub.f32 %v5602_v43, %v626_v21  ;;  %v628_v0 = vmul.f32 0.0078125, %v540_v18  ;;  %v629_v1 = vmul.f32 0.0078125, %v542_v39  ;;  %v5604_v21 = vunpack.c.l.bf16 %v4291_v60 }
 0x117   : > { %v5609_v60 = vunpack.c.h.bf16 %v4300_v63 }
 0x118   : > { %846 = vadd.xlane.f32.xlu1 %v749_v25  ;;  %848 = vadd.xlane.f32.xlu0 %v750_v32  ;;  %v5603_v25 = vunpack.c.h.bf16 %v4282_v57  ;;  %v4688_v51 = vsub.f32 %v5604_v21, %v628_v0  ;;  %v754_v27 = vmul.f32 %v4676_v45, %v4676_v45  ;;  %v4694_v24 = vsub.f32 %v5605_v42, %v629_v1 }
 0x119   : > { %v544_v16 = vpop.xlane.xlu0 %543  ;;  %v546_v48 = vpop.xlane.xlu1 %545  ;;  %v5607_v57 = vunpack.c.l.bf16 %v4300_v63 }
 0x11a   : > { %v4684_v32 = vsub.f32 %v5603_v25, %v627_v8  ;;  %v630_v18 = vmul.f32 0.0078125, %v544_v16  ;;  %5606 = vst [vmem:[#allocation21_spill] sm:$0xff] %v4694_v24  ;;  %v631_v39 = vmul.f32 0.0078125, %v546_v48  ;;  %v756_v8 = vmul.f32 %v4688_v51, %v4688_v51 }
 0x11b   : > { %v757_v48 = vmul.f32 %v4694_v24, %v4694_v24  ;;  %v5614_v24 = vunpack.c.h.bf16 %v4318_v53 }
 0x11c   : > { %850 = vadd.xlane.f32.xlu1 %v751_v58  ;;  %852 = vadd.xlane.f32.xlu0 %v752_v10  ;;  %v4698_v58 = vsub.f32 %v5607_v57, %v630_v18  ;;  %v755_v10 = vmul.f32 %v4684_v32, %v4684_v32  ;;  %v4706_v42 = vsub.f32 %v5609_v60, %v631_v39 }
 0x11d   : > { %v548_v43 = vpop.xlane.xlu0 %547  ;;  %v550_v36 = vpop.xlane.xlu1 %549 }
 0x11e   : > { %5608 = vst [vmem:[#allocation22_spill] sm:$0xff] %v4698_v58  ;;  %v632_v0 = vmul.f32 0.0078125, %v548_v43  ;;  %5610 = vst [vmem:[#allocation23_spill] sm:$0xff] %v4706_v42  ;;  %v758_v21 = vmul.f32 %v4698_v58, %v4698_v58  ;;  %v759_v63 = vmul.f32 %v4706_v42, %v4706_v42 }
 0x120   : > { %854 = vadd.xlane.f32.xlu1 %v753_v54  ;;  %856 = vadd.xlane.f32.xlu0 %v754_v27  ;;  %v5611_v54 = vunpack.c.l.bf16 %v4309_v55  ;;  %v633_v27 = vmul.f32 0.0078125, %v550_v36 }
 0x121   : > { %v552_v16 = vpop.xlane.xlu0 %551  ;;  %v554_v25 = vpop.xlane.xlu1 %553 }
 0x122   : > { %v4712_v1 = vsub.f32 %v5611_v54, %v632_v0  ;;  %v634_v18 = vmul.f32 0.0078125, %v552_v16  ;;  %v635_v39 = vmul.f32 0.0078125, %v554_v25  ;;  %v5613_v0 = vunpack.c.l.bf16 %v4318_v53 }
 0x123   : > { %v5618_v53 = vunpack.c.h.bf16 %v4327_v52 }
 0x124   : > { %858 = vadd.xlane.f32.xlu1 %v755_v10  ;;  %860 = vadd.xlane.f32.xlu0 %v756_v8  ;;  %v5612_v10 = vunpack.c.h.bf16 %v4309_v55  ;;  %v4724_v60 = vsub.f32 %v5613_v0, %v634_v18  ;;  %v760_v36 = vmul.f32 %v4712_v1, %v4712_v1  ;;  %v4730_v42 = vsub.f32 %v5614_v24, %v635_v39 }
 0x125   : > { %v556_v43 = vpop.xlane.xlu0 %555  ;;  %v558_v57 = vpop.xlane.xlu1 %557  ;;  %v5616_v55 = vunpack.c.l.bf16 %v4327_v52 }
 0x126   : > { %v4720_v8 = vsub.f32 %v5612_v10, %v633_v27  ;;  %v636_v16 = vmul.f32 0.0078125, %v556_v43  ;;  %5615 = vst [vmem:[#allocation24_spill] sm:$0xff] %v4730_v42  ;;  %v637_v25 = vmul.f32 0.0078125, %v558_v57  ;;  %v762_v27 = vmul.f32 %v4724_v60, %v4724_v60 }
 0x127   : > { %v763_v57 = vmul.f32 %v4730_v42, %v4730_v42 }
 0x128   : > { %862 = vadd.xlane.f32.xlu1 %v757_v48  ;;  %864 = vadd.xlane.f32.xlu0 %v758_v21  ;;  %v4734_v48 = vsub.f32 %v5616_v55, %v636_v16  ;;  %v761_v21 = vmul.f32 %v4720_v8, %v4720_v8  ;;  %v4742_v24 = vsub.f32 %v5618_v53, %v637_v25 }
 0x129   : > { %v560_v54 = vpop.xlane.xlu0 %559  ;;  %v562_v58 = vpop.xlane.xlu1 %561 }
 0x12a   : > { %5617 = vst [vmem:[#allocation25_spill] sm:$0xff] %v4734_v48  ;;  %v638_v18 = vmul.f32 0.0078125, %v560_v54  ;;  %v764_v0 = vmul.f32 %v4734_v48, %v4734_v48  ;;  %v765_v52 = vmul.f32 %v4742_v24, %v4742_v24  ;;  %v5622_v48 = vunpack.c.h.bf16 %v4345_v49 }
 0x12c   : > { %866 = vadd.xlane.f32.xlu1 %v759_v63  ;;  %868 = vadd.xlane.f32.xlu0 %v760_v36  ;;  %v5619_v63 = vunpack.c.l.bf16 %v4336_v50  ;;  %v639_v36 = vmul.f32 0.0078125, %v562_v58 }
 0x12d   : > { %v564_v43 = vpop.xlane.xlu0 %563  ;;  %v566_v10 = vpop.xlane.xlu1 %565 }
 0x12e   : > { %v4748_v39 = vsub.f32 %v5619_v63, %v638_v18  ;;  %v640_v16 = vmul.f32 0.0078125, %v564_v43  ;;  %v641_v25 = vmul.f32 0.0078125, %v566_v10  ;;  %v5621_v18 = vunpack.c.l.bf16 %v4345_v49 }
 0x12f   : > { %v5626_v49 = vunpack.c.h.bf16 %v4354_v47 }
 0x130   : > { %870 = vadd.xlane.f32.xlu1 %v761_v21  ;;  %872 = vadd.xlane.f32.xlu0 %v762_v27  ;;  %v5620_v21 = vunpack.c.h.bf16 %v4336_v50  ;;  %v4760_v53 = vsub.f32 %v5621_v18, %v640_v16  ;;  %v766_v58 = vmul.f32 %v4748_v39, %v4748_v39  ;;  %v4766_v42 = vsub.f32 %v5622_v48, %v641_v25 }
 0x131   : > { %v568_v54 = vpop.xlane.xlu0 %567  ;;  %v570_v55 = vpop.xlane.xlu1 %569  ;;  %v5624_v50 = vunpack.c.l.bf16 %v4354_v47 }
 0x132   : > { %v4756_v27 = vsub.f32 %v5620_v21, %v639_v36  ;;  %v642_v43 = vmul.f32 0.0078125, %v568_v54  ;;  %5623 = vst [vmem:[#allocation26_spill] sm:$0xff] %v4766_v42  ;;  %v643_v10 = vmul.f32 0.0078125, %v570_v55  ;;  %v768_v16 = vmul.f32 %v4760_v53, %v4760_v53 }
 0x133   : > { %v769_v55 = vmul.f32 %v4766_v42, %v4766_v42 }
 0x134   : > { %874 = vadd.xlane.f32.xlu1 %v763_v57  ;;  %876 = vadd.xlane.f32.xlu0 %v764_v0  ;;  %v4770_v0 = vsub.f32 %v5624_v50, %v642_v43  ;;  %v767_v36 = vmul.f32 %v4756_v27, %v4756_v27  ;;  %v4778_v48 = vsub.f32 %v5626_v49, %v643_v10  ;;  %v5630_v10 = vunpack.c.h.bf16 %v4363_v61 }
 0x135   : > { %v572_v63 = vpop.xlane.xlu0 %571  ;;  %v574_v57 = vpop.xlane.xlu1 %573 }
 0x136   : > { %5625 = vst [vmem:[#allocation27_spill] sm:$0xff] %v4770_v0  ;;  %v644_v54 = vmul.f32 0.0078125, %v572_v63  ;;  %5627 = vst [vmem:[#allocation28_spill] sm:$0xff] %v4778_v48  ;;  %v770_v18 = vmul.f32 %v4770_v0, %v4770_v0  ;;  %v771_v47 = vmul.f32 %v4778_v48, %v4778_v48 }
 0x138   : > { %878 = vadd.xlane.f32.xlu1 %v765_v52  ;;  %880 = vadd.xlane.f32.xlu0 %v766_v58  ;;  %v5628_v52 = vunpack.c.l.bf16 %v4363_v61  ;;  %v645_v58 = vmul.f32 0.0078125, %v574_v57  ;;  %v5634_v57 = vunpack.c.h.bf16 %v4372_v56 }
 0x139   : > { %v576_v21 = vpop.xlane.xlu0 %575  ;;  %v578_v63 = vpop.xlane.xlu1 %577 }
 0x13a   : > { %v4784_v25 = vsub.f32 %v5628_v52, %v644_v54  ;;  %v646_v43 = vmul.f32 0.0078125, %v576_v21  ;;  %v4792_v50 = vsub.f32 %v5630_v10, %v645_v58  ;;  %v647_v49 = vmul.f32 0.0078125, %v578_v63 }
 0x13c   : > { %882 = vadd.xlane.f32.xlu1 %v767_v36  ;;  %884 = vadd.xlane.f32.xlu0 %v768_v16  ;;  %5629 = vst [vmem:[#allocation29_spill] sm:$0xff] %v4784_v25  ;;  %5631 = vst [vmem:[#allocation30_spill] sm:$0xff] %v4792_v50  ;;  %v5632_v36 = vunpack.c.l.bf16 %v4372_v56  ;;  %v772_v54 = vmul.f32 %v4784_v25, %v4784_v25  ;;  %v4802_v21 = vsub.f32 %v5634_v57, %v647_v49 }
 0x13e   : > { %v4796_v16 = vsub.f32 %v5632_v36, %v646_v43  ;;  %5635 = vst [vmem:[#allocation32_spill] sm:$0xff] %v4802_v21  ;;  %v775_v52 = vmul.f32 %v4802_v21, %v4802_v21 }
 0x140   : > { %886 = vadd.xlane.f32.xlu1 %v769_v55  ;;  %888 = vadd.xlane.f32.xlu0 %v770_v18  ;;  %5633 = vst [vmem:[#allocation31_spill] sm:$0xff] %v4796_v16  ;;  %v773_v55 = vmul.f32 %v4792_v50, %v4792_v50  ;;  %v774_v61 = vmul.f32 %v4796_v16, %v4796_v16 }
 0x144   : > { %890 = vadd.xlane.f32.xlu1 %v771_v47  ;;  %892 = vadd.xlane.f32.xlu0 %v772_v54 }
 0x148   : > { %894 = vadd.xlane.f32.xlu1 %v773_v55  ;;  %896 = vadd.xlane.f32.xlu0 %v774_v61 }
 0x14c   : > { %898 = vadd.xlane.f32.xlu1 %v775_v52 }
 0x159   : > { %v781_v18 = vpop.xlane.xlu0 %780 }
 0x15a   : > { %v908_v58 = vmul.f32 0.0078125, %v781_v18 }
 0x15c   : > { %v972_v43 = vadd.f32 1e-05, %v908_v58 }
 0x15d   : > { %v783_v63 = vpop.xlane.xlu1 %782  ;;  %v785_v47 = vpop.xlane.xlu0 %784 }
 0x15e   : > { %3788 = vrsqrt.f32 %v972_v43  ;;  %v909_v56 = vmul.f32 0.0078125, %v783_v63  ;;  %v910_v10 = vmul.f32 0.0078125, %v785_v47 }
 0x160   : > { %v973_v36 = vadd.f32 1e-05, %v909_v56  ;;  %v974_v54 = vadd.f32 1e-05, %v910_v10 }
 0x161   : > { %v787_v49 = vpop.xlane.xlu1 %786  ;;  %v789_v57 = vpop.xlane.xlu0 %788 }
 0x162   : > { %3790 = vrsqrt.f32 %v973_v36  ;;  %v911_v16 = vmul.f32 0.0078125, %v787_v49  ;;  %v912_v55 = vmul.f32 0.0078125, %v789_v57 }
 0x163   : > { %3792 = vrsqrt.f32 %v974_v54 }
 0x164   : > { %v975_v61 = vadd.f32 1e-05, %v911_v16  ;;  %v976_v50 = vadd.f32 1e-05, %v912_v55  ;;  %v4814_v16 = vld [vmem:[%s5507_s1] ss:$0 sm:$0xff] }
 0x165   : > { %v791_v21 = vpop.xlane.xlu1 %790  ;;  %v793_v52 = vpop.xlane.xlu0 %792 }
 0x166   : > { %3794 = vrsqrt.f32 %v975_v61  ;;  %v913_v18 = vmul.f32 0.0078125, %v791_v21  ;;  %v914_v58 = vmul.f32 0.0078125, %v793_v52 }
 0x167   : > { %3796 = vrsqrt.f32 %v976_v50 }
 0x168   : > { %v3789_v25 = vpop.eup %3788  ;;  %v977_v43 = vadd.f32 1e-05, %v913_v18  ;;  %v978_v63 = vadd.f32 1e-05, %v914_v58  ;;  %v4821_v58 = vld [vmem:[%s5508_s2] ss:$0 sm:$0xff] }
 0x169   : > { %v795_v47 = vpop.xlane.xlu1 %794  ;;  %v797_v56 = vpop.xlane.xlu0 %796  ;;  %v1108_v10 = vmul.f32 %v3789_v25, %v4386_v62 }
 0x16a   : > { %3798 = vrsqrt.f32 %v977_v43  ;;  %v915_v36 = vmul.f32 0.0078125, %v795_v47  ;;  %v916_v49 = vmul.f32 0.0078125, %v797_v56 }
 0x16b   : > { %3800 = vrsqrt.f32 %v978_v63  ;;  %v1196_v18 = vmul.f32 %v4814_v16, %v1108_v10 }
 0x16c   : > { %v3791_v54 = vpop.eup %3790  ;;  %v979_v21 = vadd.f32 1e-05, %v915_v36  ;;  %v980_v57 = vadd.f32 1e-05, %v916_v49 }
 0x16d   : > { %v3793_v50 = vpop.eup %3792  ;;  %v799_v55 = vpop.xlane.xlu1 %798  ;;  %v1109_v52 = vmul.f32 %v3791_v54, %v4398_v59 }
 0x16e   : > { %v801_v61 = vpop.xlane.xlu0 %800  ;;  %3802 = vrsqrt.f32 %v979_v21  ;;  %v917_v62 = vmul.f32 0.0078125, %v799_v55  ;;  %v1110_v43 = vmul.f32 %v3793_v50, %v4390_v44  ;;  %v1284_v21 = vadd.f32 %v4821_v58, %v1196_v18 }
 0x16f   : > { %v918_v25 = vmul.f32 0.0078125, %v801_v61  ;;  %3804 = vrsqrt.f32 %v980_v57  ;;  %v1197_v63 = vmul.f32 %v4814_v16, %v1109_v52 }
 0x170   : > { %v3795_v47 = vpop.eup %3794  ;;  %v981_v56 = vadd.f32 1e-05, %v917_v62  ;;  %v1198_v59 = vmul.f32 %v4814_v16, %v1110_v43 }
 0x171   : > { %v982_v36 = vadd.f32 1e-05, %v918_v25  ;;  %v3797_v49 = vpop.eup %3796  ;;  %v803_v10 = vpop.xlane.xlu1 %802  ;;  %v1285_v55 = vadd.f32 %v4821_v58, %v1197_v63  ;;  %v1111_v61 = vmul.f32 %v3795_v47, %v4402_v2 }
 0x172   : > { %v805_v54 = vpop.xlane.xlu0 %804  ;;  %3806 = vrsqrt.f32 %v981_v56  ;;  %v919_v48 = vmul.f32 0.0078125, %v803_v10  ;;  %v1112_v52 = vmul.f32 %v3797_v49, %v4416_v5  ;;  %v1286_v0 = vadd.f32 %v4821_v58, %v1198_v59 }
 0x173   : > { %v920_v44 = vmul.f32 0.0078125, %v805_v54  ;;  %3808 = vrsqrt.f32 %v982_v36  ;;  %v1348_v57 = vpack.c.bf16 %v1285_v55, %v1284_v21  ;;  %v1199_v50 = vmul.f32 %v4814_v16, %v1111_v61 }
 0x174   : > { %v3799_v62 = vpop.eup %3798  ;;  %v983_v25 = vadd.f32 1e-05, %v919_v48  ;;  %v1200_v56 = vmul.f32 %v4814_v16, %v1112_v52 }
 0x175   : > { %v984_v43 = vadd.f32 1e-05, %v920_v44  ;;  %v3801_v42 = vpop.eup %3800  ;;  %v807_v18 = vpop.xlane.xlu1 %806  ;;  %3545 = vmatprep.mubr.bf16.mxu0 %v1348_v57  ;;  %3625 = vmatprep.mubr.bf16.mxu1 %v1348_v57  ;;  %v1287_v2 = vadd.f32 %v4821_v58, %v1199_v50  ;;  %v1113_v47 = vmul.f32 %v3799_v62, %v4420_v34 }
 0x176   : > { %v809_v63 = vpop.xlane.xlu0 %808  ;;  %3810 = vrsqrt.f32 %v983_v25  ;;  %v921_v36 = vmul.f32 0.0078125, %v807_v18  ;;  %v1114_v5 = vmul.f32 %v3801_v42, %v4428_v7  ;;  %v1288_v57 = vadd.f32 %v4821_v58, %v1200_v56 }
 0x177   : > { %v922_v10 = vmul.f32 0.0078125, %v809_v63  ;;  %3812 = vrsqrt.f32 %v984_v43  ;;  %v1349_v48 = vpack.c.bf16 %v1287_v2, %v1286_v0  ;;  %v1201_v59 = vmul.f32 %v4814_v16, %v1113_v47 }
 0x178   : > { %v3803_v49 = vpop.eup %3802  ;;  %v985_v54 = vadd.f32 1e-05, %v921_v36  ;;  %v1202_v55 = vmul.f32 %v4814_v16, %v1114_v5 }
 0x179   : > { %v986_v21 = vadd.f32 1e-05, %v922_v10  ;;  %v3805_v61 = vpop.eup %3804  ;;  %v811_v44 = vpop.xlane.xlu1 %810  ;;  %3546 = vmatmul.mubr.bf16.vlgmr.msra.gmra.mrb[0].mxu0 %v1349_v48  ;;  %3626 = vmatmul.mubr.bf16.vlgmr.msra.gmra.mrb[0].mxu1 %v1349_v48  ;;  %v1289_v50 = vadd.f32 %v4821_v58, %v1201_v59  ;;  %v1115_v7 = vmul.f32 %v3803_v49, %v4432_v6 }
 0x17a   : > { %v813_v34 = vpop.xlane.xlu0 %812  ;;  %3814 = vrsqrt.f32 %v985_v54  ;;  %v923_v42 = vmul.f32 0.0078125, %v811_v44  ;;  %v1116_v25 = vmul.f32 %v3805_v61, %v4440_v11  ;;  %v1290_v2 = vadd.f32 %v4821_v58, %v1202_v55 }
 0x17b   : > { %v924_v0 = vmul.f32 0.0078125, %v813_v34  ;;  %3816 = vrsqrt.f32 %v986_v21  ;;  %v1350_v52 = vpack.c.bf16 %v1289_v50, %v1288_v57  ;;  %v1203_v62 = vmul.f32 %v4814_v16, %v1115_v7 }
 0x17c   : > { %v3807_v43 = vpop.eup %3806  ;;  %v987_v18 = vadd.f32 1e-05, %v923_v42  ;;  %v1204_v5 = vmul.f32 %v4814_v16, %v1116_v25 }
 0x17d   : > { %v988_v63 = vadd.f32 1e-05, %v924_v0  ;;  %v3809_v47 = vpop.eup %3808  ;;  %v815_v56 = vpop.xlane.xlu1 %814  ;;  %3549 = vmatprep.mubr.bf16.mxu0 %v1350_v52  ;;  %3629 = vmatprep.mubr.bf16.mxu1 %v1350_v52  ;;  %v1291_v6 = vadd.f32 %v4821_v58, %v1203_v62  ;;  %v1117_v10 = vmul.f32 %v3807_v43, %v4444_v9 }
 0x17e   : > { %v817_v36 = vpop.xlane.xlu0 %816  ;;  %3818 = vrsqrt.f32 %v987_v18  ;;  %v925_v48 = vmul.f32 0.0078125, %v815_v56  ;;  %v1118_v11 = vmul.f32 %v3809_v47, %v4458_v15  ;;  %v1292_v50 = vadd.f32 %v4821_v58, %v1204_v5 }
 0x17f   : > { %v926_v59 = vmul.f32 0.0078125, %v817_v36  ;;  %3820 = vrsqrt.f32 %v988_v63  ;;  %v1351_v49 = vpack.c.bf16 %v1291_v6, %v1290_v2  ;;  %v1205_v54 = vmul.f32 %v4814_v16, %v1117_v10 }
 0x180   : > { %v3811_v21 = vpop.eup %3810  ;;  %v989_v55 = vadd.f32 1e-05, %v925_v48  ;;  %v1206_v44 = vmul.f32 %v4814_v16, %v1118_v11 }
 0x181   : > { %v990_v61 = vadd.f32 1e-05, %v926_v59  ;;  %v3813_v34 = vpop.eup %3812  ;;  %v819_v57 = vpop.xlane.xlu1 %818  ;;  %3550 = vmatmul.mubr.bf16.gmra.mrb[4].mxu0 %v1351_v49  ;;  %3630 = vmatmul.mubr.bf16.gmra.mrb[4].mxu1 %v1351_v49  ;;  %v1293_v7 = vadd.f32 %v4821_v58, %v1205_v54  ;;  %v1119_v15 = vmul.f32 %v3811_v21, %v4462_v46 }
 0x182   : > { %v821_v9 = vpop.xlane.xlu0 %820  ;;  %3822 = vrsqrt.f32 %v989_v55  ;;  %v927_v42 = vmul.f32 0.0078125, %v819_v57  ;;  %v1120_v25 = vmul.f32 %v3813_v34, %v4470_v13  ;;  %v1294_v2 = vadd.f32 %v4821_v58, %v1206_v44 }
 0x183   : > { %v928_v0 = vmul.f32 0.0078125, %v821_v9  ;;  %3824 = vrsqrt.f32 %v990_v61  ;;  %v1352_v52 = vpack.c.bf16 %v1293_v7, %v1292_v50  ;;  %v1207_v62 = vmul.f32 %v4814_v16, %v1119_v15  ;;  %v4868_v7 = vld [vmem:[%s5507_s1 + $0x1] ss:$0 sm:$0xff] }
 0x184   : > { %v3815_v43 = vpop.eup %3814  ;;  %v991_v18 = vadd.f32 1e-05, %v927_v42  ;;  %v1208_v10 = vmul.f32 %v4814_v16, %v1120_v25  ;;  %v5636_v25 = vunpack.c.l.bf16 %v4573_v19 }
 0x185   : > { %v992_v63 = vadd.f32 1e-05, %v928_v0  ;;  %v3817_v47 = vpop.eup %3816  ;;  %v823_v56 = vpop.xlane.xlu1 %822  ;;  %3553 = vmatprep.mubr.bf16.mxu0 %v1352_v52  ;;  %3633 = vmatprep.mubr.bf16.mxu1 %v1352_v52  ;;  %v1295_v46 = vadd.f32 %v4821_v58, %v1207_v62  ;;  %v1121_v6 = vmul.f32 %v3815_v43, %v4474_v17 }
 0x186   : > { %v825_v36 = vpop.xlane.xlu0 %824  ;;  %3826 = vrsqrt.f32 %v991_v18  ;;  %v929_v5 = vmul.f32 0.0078125, %v823_v56  ;;  %v1122_v13 = vmul.f32 %v3817_v47, %v4488_v20  ;;  %v1296_v34 = vadd.f32 %v4821_v58, %v1208_v10 }
 0x187   : > { %v930_v48 = vmul.f32 0.0078125, %v825_v36  ;;  %3828 = vrsqrt.f32 %v992_v63  ;;  %v1353_v59 = vpack.c.bf16 %v1295_v46, %v1294_v2  ;;  %v1209_v11 = vmul.f32 %v4814_v16, %v1121_v6 }
 0x188   : > { %v3819_v49 = vpop.eup %3818  ;;  %v993_v54 = vadd.f32 1e-05, %v929_v5  ;;  %v1210_v55 = vmul.f32 %v4814_v16, %v1122_v13  ;;  %v5637_v13 = vunpack.c.h.bf16 %v4573_v19 }
 0x189   : > { %v994_v21 = vadd.f32 1e-05, %v930_v48  ;;  %v3821_v61 = vpop.eup %3820  ;;  %v827_v44 = vpop.xlane.xlu1 %826  ;;  %3554 = vmatmul.mubr.bf16.gmra.mrb[8].mxu0 %v1353_v59  ;;  %3634 = vmatmul.mubr.bf16.gmra.mrb[8].mxu1 %v1353_v59  ;;  %v1297_v57 = vadd.f32 %v4821_v58, %v1209_v11  ;;  %v1123_v20 = vmul.f32 %v3819_v49, %v4492_v37 }
 0x18a   : > { %v580_v17 = vpop.xlane.xlu0 %579  ;;  %3830 = vrsqrt.f32 %v993_v54  ;;  %v931_v9 = vmul.f32 0.0078125, %v827_v44  ;;  %v1124_v0 = vmul.f32 %v3821_v61, %v4506_v23  ;;  %v1298_v37 = vadd.f32 %v4821_v58, %v1210_v55 }
 0x18b   : > { %v648_v50 = vmul.f32 0.0078125, %v580_v17  ;;  %3832 = vrsqrt.f32 %v994_v21  ;;  %v1354_v15 = vpack.c.bf16 %v1297_v57, %v1296_v34  ;;  %v1211_v42 = vmul.f32 %v4814_v16, %v1123_v20  ;;  %v4881_v16 = vld [vmem:[%s5508_s2 + $0x1] ss:$0 sm:$0xff] }
 0x18c   : > { %v3823_v52 = vpop.eup %3822  ;;  %v995_v62 = vadd.f32 1e-05, %v931_v9  ;;  %v1212_v56 = vmul.f32 %v4868_v7, %v1124_v0 }
 0x18d   : > { %v4874_v43 = vsub.f32 %v5636_v25, %v648_v50  ;;  %v3825_v18 = vpop.eup %3824  ;;  %v582_v63 = vpop.xlane.xlu1 %581  ;;  %3557 = vmatprep.mubr.bf16.mxu0 %v1354_v15  ;;  %3637 = vmatprep.mubr.bf16.mxu1 %v1354_v15  ;;  %v1299_v47 = vadd.f32 %v4821_v58, %v1211_v42  ;;  %v1125_v23 = vmul.f32 %v3823_v52, %v4510_v4  ;;  %v5638_v4 = vunpack.c.l.bf16 %v4581_v28 }
 0x18e   : > { %v584_v2 = vpop.xlane.xlu0 %583  ;;  %3834 = vrsqrt.f32 %v995_v62  ;;  %v649_v36 = vmul.f32 0.0078125, %v582_v63  ;;  %v1126_v58 = vmul.f32 %v3825_v18, %v4524_v26  ;;  %v1300_v49 = vadd.f32 %v4881_v16, %v1212_v56 }
 0x18f   : > { %v650_v46 = vmul.f32 0.0078125, %v584_v2  ;;  %v776_v6 = vmul.f32 %v4874_v43, %v4874_v43  ;;  %v1355_v10 = vpack.c.bf16 %v1299_v47, %v1298_v37  ;;  %v1213_v5 = vmul.f32 %v4868_v7, %v1125_v23 }
 0x190   : > { %v3827_v48 = vpop.eup %3826  ;;  %v4891_v59 = vsub.f32 %v5637_v13, %v649_v36  ;;  %v1214_v19 = vmul.f32 %v4868_v7, %v1126_v58  ;;  %v5639_v42 = vunpack.c.h.bf16 %v4581_v28 }
 0x191   : > { %v4895_v11 = vsub.f32 %v5638_v4, %v650_v46  ;;  %900 = vadd.xlane.f32.xlu0 %v776_v6  ;;  %v3829_v54 = vpop.eup %3828  ;;  %v586_v21 = vpop.xlane.xlu1 %585  ;;  %3558 = vmatmul.mubr.bf16.gmra.mrb[12].mxu0 %v1355_v10  ;;  %v1301_v61 = vadd.f32 %v4881_v16, %v1213_v5  ;;  %v1127_v26 = vmul.f32 %v3827_v48, %v4528_v3 }
 0x192   : > { %3638 = vmatmul.mubr.bf16.gmra.mrb[12].mxu1 %v1355_v10  ;;  %v829_v55 = vpop.xlane.xlu0 %828  ;;  %v651_v44 = vmul.f32 0.0078125, %v586_v21  ;;  %v777_v34 = vmul.f32 %v4891_v59, %v4891_v59  ;;  %v1128_v50 = vmul.f32 %v3829_v54, %v4542_v29  ;;  %v1302_v52 = vadd.f32 %v4881_v16, %v1214_v19 }
 0x193   : > { %v932_v17 = vmul.f32 0.0078125, %v829_v55  ;;  %v778_v57 = vmul.f32 %v4895_v11, %v4895_v11  ;;  %v1356_v20 = vpack.c.bf16 %v1301_v61, %v1300_v49  ;;  %v1215_v9 = vmul.f32 %v4868_v7, %v1127_v26 }
 0x194   : > { %v3831_v15 = vpop.eup %3830  ;;  %v4909_v0 = vsub.f32 %v5639_v42, %v651_v44  ;;  %902 = vadd.xlane.f32.xlu1 %v777_v34  ;;  %v1216_v29 = vmul.f32 %v4868_v7, %v1128_v50 }
 0x195   : > { %v996_v3 = vadd.f32 1e-05, %v932_v17  ;;  %904 = vadd.xlane.f32.xlu0 %v778_v57  ;;  %v3833_v62 = vpop.eup %3832  ;;  %v831_v25 = vpop.xlane.xlu1 %830  ;;  %3561 = vmatprep.mubr.bf16.mxu0 %v1356_v20  ;;  %v1303_v18 = vadd.f32 %v4881_v16, %v1215_v9  ;;  %v1129_v63 = vmul.f32 %v3831_v15, %v4546_v41 }
 0x196   : > { %3641 = vmatprep.mubr.bf16.mxu1 %v1356_v20  ;;  %v833_v37 = vpop.xlane.xlu0 %832  ;;  %v933_v28 = vmul.f32 0.0078125, %v831_v25  ;;  %v779_v47 = vmul.f32 %v4909_v0, %v4909_v0  ;;  %v1130_v36 = vmul.f32 %v3833_v62, %v4560_v35  ;;  %v1304_v5 = vadd.f32 %v4881_v16, %v1216_v29 }
 0x197   : > { %3836 = vrsqrt.f32 %v996_v3  ;;  %v934_v2 = vmul.f32 0.0078125, %v833_v37  ;;  %v1357_v23 = vpack.c.bf16 %v1303_v18, %v1302_v52  ;;  %v1217_v56 = vmul.f32 %v4868_v7, %v1129_v63 }
 0x198   : > { %v3835_v46 = vpop.eup %3834  ;;  %v997_v6 = vadd.f32 1e-05, %v933_v28  ;;  %906 = vadd.xlane.f32.xlu1 %v779_v47  ;;  %v1218_v4 = vmul.f32 %v4868_v7, %v1130_v36 }
 0x199   : > { %v998_v10 = vadd.f32 1e-05, %v934_v2  ;;  %v835_v41 = vpop.xlane.xlu1 %834  ;;  %3562 = vmatmul.mubr.bf16.gmra.mrb[16].mxu0 %v1357_v23  ;;  %v1305_v48 = vadd.f32 %v4881_v16, %v1217_v56  ;;  %v1131_v13 = vmul.f32 %v3835_v46, %v4564_v38  ;;  %v5640_v2 = vld [vmem:[#allocation14_spill] sm:$0xff] }
 0x19a   : > { %3642 = vmatmul.mubr.bf16.gmra.mrb[16].mxu1 %v1357_v23  ;;  %v837_v58 = vpop.xlane.xlu0 %836  ;;  %3838 = vrsqrt.f32 %v997_v6  ;;  %v935_v49 = vmul.f32 0.0078125, %v835_v41  ;;  %v1306_v44 = vadd.f32 %v4881_v16, %v1218_v4 }
 0x19b   : > { %v936_v54 = vmul.f32 0.0078125, %v837_v58  ;;  %3840 = vrsqrt.f32 %v998_v10  ;;  %v1358_v35 = vpack.c.bf16 %v1305_v48, %v1304_v5  ;;  %v1219_v21 = vmul.f32 %v4868_v7, %v1131_v13 }
 0x19c   : > { %v999_v55 = vadd.f32 1e-05, %v935_v49 }
 0x19d   : > { %v1000_v61 = vadd.f32 1e-05, %v936_v54  ;;  %v839_v26 = vpop.xlane.xlu1 %838  ;;  %3565 = vmatprep.mubr.bf16.mxu0 %v1358_v35  ;;  %3645 = vmatprep.mubr.bf16.mxu1 %v1358_v35  ;;  %v1307_v17 = vadd.f32 %v4881_v16, %v1219_v21 }
 0x19e   : > { %v841_v19 = vpop.xlane.xlu0 %840  ;;  %3842 = vrsqrt.f32 %v999_v55  ;;  %v937_v38 = vmul.f32 0.0078125, %v839_v26 }
 0x19f   : > { %v938_v34 = vmul.f32 0.0078125, %v841_v19  ;;  %3844 = vrsqrt.f32 %v1000_v61  ;;  %v1359_v57 = vpack.c.bf16 %v1307_v17, %v1306_v44 }
 0x1a0   : > { %v1001_v9 = vadd.f32 1e-05, %v937_v38 }
 0x1a1   : > { %v3837_v20 = vpop.eup %3836  ;;  %v1002_v50 = vadd.f32 1e-05, %v938_v34  ;;  %v843_v15 = vpop.xlane.xlu1 %842  ;;  %3566 = vmatmul.mubr.bf16.gmra.mrb[20].mxu0 %v1359_v57 }
 0x1a2   : > { %3646 = vmatmul.mubr.bf16.gmra.mrb[20].mxu1 %v1359_v57  ;;  %v845_v42 = vpop.xlane.xlu0 %844  ;;  %v1132_v3 = vmul.f32 %v3837_v20, %v4589_v12  ;;  %3846 = vrsqrt.f32 %v1001_v9  ;;  %v939_v52 = vmul.f32 0.0078125, %v843_v15  ;;  %v5641_v20 = vld [vmem:[#allocation15_spill] sm:$0xff] }
 0x1a3   : > { %v940_v62 = vmul.f32 0.0078125, %v845_v42  ;;  %3848 = vrsqrt.f32 %v1002_v50 }
 0x1a4   : > { %v3839_v25 = vpop.eup %3838  ;;  %v1003_v37 = vadd.f32 1e-05, %v939_v52  ;;  %v1220_v23 = vmul.f32 %v4868_v7, %v1132_v3 }
 0x1a5   : > { %v1004_v18 = vadd.f32 1e-05, %v940_v62  ;;  %v3841_v63 = vpop.eup %3840  ;;  %v847_v29 = vpop.xlane.xlu1 %846  ;;  %v1133_v47 = vmul.f32 %v3839_v25, %v5640_v2 }
 0x1a6   : > { %v849_v28 = vpop.xlane.xlu0 %848  ;;  %3850 = vrsqrt.f32 %v1003_v37  ;;  %v941_v56 = vmul.f32 0.0078125, %v847_v29  ;;  %v1134_v46 = vmul.f32 %v3841_v63, %v4604_v40  ;;  %v1308_v4 = vadd.f32 %v4881_v16, %v1220_v23 }
 0x1a7   : > { %v942_v36 = vmul.f32 0.0078125, %v849_v28  ;;  %3852 = vrsqrt.f32 %v1004_v18  ;;  %v1221_v12 = vmul.f32 %v4868_v7, %v1133_v47 }
 0x1a8   : > { %v3843_v6 = vpop.eup %3842  ;;  %v1005_v10 = vadd.f32 1e-05, %v941_v56  ;;  %v1222_v41 = vmul.f32 %v4868_v7, %v1134_v46  ;;  %v5643_v56 = vld [vmem:[#allocation17_spill] sm:$0xff] }
 0x1a9   : > { %v1006_v5 = vadd.f32 1e-05, %v942_v36  ;;  %v3845_v58 = vpop.eup %3844  ;;  %v851_v48 = vpop.xlane.xlu1 %850  ;;  %v1309_v49 = vadd.f32 %v4881_v16, %v1221_v12  ;;  %v1135_v54 = vmul.f32 %v3843_v6, %v4614_v30  ;;  %v4950_v6 = vld [vmem:[%s5507_s1 + $0x2] ss:$0 sm:$0xff] }
 0x1aa   : > { %v853_v13 = vpop.xlane.xlu0 %852  ;;  %3854 = vrsqrt.f32 %v1005_v10  ;;  %v943_v35 = vmul.f32 0.0078125, %v851_v48  ;;  %v1136_v61 = vmul.f32 %v3845_v58, %v4618_v33  ;;  %v1310_v17 = vadd.f32 %v4881_v16, %v1222_v41  ;;  %v5642_v33 = vld [vmem:[#allocation16_spill] sm:$0xff] }
 0x1ab   : > { %v944_v40 = vmul.f32 0.0078125, %v853_v13  ;;  %3856 = vrsqrt.f32 %v1006_v5  ;;  %v1360_v21 = vpack.c.bf16 %v1309_v49, %v1308_v4  ;;  %v1223_v55 = vmul.f32 %v4868_v7, %v1135_v54 }
 0x1ac   : > { %v3847_v26 = vpop.eup %3846  ;;  %v1007_v19 = vadd.f32 1e-05, %v943_v35  ;;  %v1224_v50 = vmul.f32 %v4868_v7, %v1136_v61 }
 0x1ad   : > { %v1008_v44 = vadd.f32 1e-05, %v944_v40  ;;  %v3849_v38 = vpop.eup %3848  ;;  %v855_v34 = vpop.xlane.xlu1 %854  ;;  %3569 = vmatprep.mubr.bf16.mxu0 %v1360_v21  ;;  %3649 = vmatprep.mubr.bf16.mxu1 %v1360_v21  ;;  %v1311_v30 = vadd.f32 %v4881_v16, %v1223_v55  ;;  %v1137_v9 = vmul.f32 %v3847_v26, %v5641_v20 }
 0x1ae   : > { %v857_v57 = vpop.xlane.xlu0 %856  ;;  %3858 = vrsqrt.f32 %v1007_v19  ;;  %v945_v15 = vmul.f32 0.0078125, %v855_v34  ;;  %v1138_v3 = vmul.f32 %v3849_v38, %v5642_v33  ;;  %v1312_v47 = vadd.f32 %v4881_v16, %v1224_v50  ;;  %v5644_v50 = vld [vmem:[#allocation18_spill] sm:$0xff] }
 0x1af   : > { %v946_v42 = vmul.f32 0.0078125, %v857_v57  ;;  %3860 = vrsqrt.f32 %v1008_v44  ;;  %v1361_v52 = vpack.c.bf16 %v1311_v30, %v1310_v17  ;;  %v1225_v62 = vmul.f32 %v4868_v7, %v1137_v9 }
 0x1b0   : > { %v3851_v25 = vpop.eup %3850  ;;  %v1009_v37 = vadd.f32 1e-05, %v945_v15  ;;  %v1226_v63 = vmul.f32 %v4868_v7, %v1138_v3 }
 0x1b1   : > { %v1010_v18 = vadd.f32 1e-05, %v946_v42  ;;  %v3853_v29 = vpop.eup %3852  ;;  %v859_v28 = vpop.xlane.xlu1 %858  ;;  %3570 = vmatmul.mubr.bf16.gmra.mrb[24].mxu0 %v1361_v52  ;;  %3650 = vmatmul.mubr.bf16.gmra.mrb[24].mxu1 %v1361_v52  ;;  %v1313_v23 = vadd.f32 %v4881_v16, %v1225_v62  ;;  %v1139_v36 = vmul.f32 %v3851_v25, %v5643_v56  ;;  %v5645_v52 = vld [vmem:[#allocation19_spill] sm:$0xff] }
 0x1b2   : > { %v861_v2 = vpop.xlane.xlu0 %860  ;;  %3862 = vrsqrt.f32 %v1009_v37  ;;  %v947_v46 = vmul.f32 0.0078125, %v859_v28  ;;  %v1140_v41 = vmul.f32 %v3853_v29, %v4640_v22  ;;  %v1314_v4 = vadd.f32 %v4881_v16, %v1226_v63  ;;  %v4961_v22 = vld [vmem:[%s5508_s2 + $0x2] ss:$0 sm:$0xff] }
 0x1b3   : > { %v948_v12 = vmul.f32 0.0078125, %v861_v2  ;;  %3864 = vrsqrt.f32 %v1010_v18  ;;  %v1362_v10 = vpack.c.bf16 %v1313_v23, %v1312_v47  ;;  %v1227_v5 = vmul.f32 %v4868_v7, %v1139_v36  ;;  %v5646_v23 = vld [vmem:[#allocation20_spill] sm:$0xff] }
 0x1b4   : > { %v3855_v58 = vpop.eup %3854  ;;  %v1011_v48 = vadd.f32 1e-05, %v947_v46  ;;  %v1228_v55 = vmul.f32 %v4950_v6, %v1140_v41 }
 0x1b5   : > { %v1012_v13 = vadd.f32 1e-05, %v948_v12  ;;  %v3857_v49 = vpop.eup %3856  ;;  %v863_v54 = vpop.xlane.xlu1 %862  ;;  %3573 = vmatprep.mubr.bf16.mxu0 %v1362_v10  ;;  %3653 = vmatprep.mubr.bf16.mxu1 %v1362_v10  ;;  %v1315_v40 = vadd.f32 %v4881_v16, %v1227_v5  ;;  %v1141_v21 = vmul.f32 %v3855_v58, %v4648_v14 }
 0x1b6   : > { %v865_v35 = vpop.xlane.xlu0 %864  ;;  %3866 = vrsqrt.f32 %v1011_v48  ;;  %v949_v7 = vmul.f32 0.0078125, %v863_v54  ;;  %v1142_v26 = vmul.f32 %v3857_v49, %v4652_v31  ;;  %v1316_v20 = vadd.f32 %v4961_v22, %v1228_v55 }
 0x1b7   : > { %v950_v61 = vmul.f32 0.0078125, %v865_v35  ;;  %3868 = vrsqrt.f32 %v1012_v13  ;;  %v1363_v19 = vpack.c.bf16 %v1315_v40, %v1314_v4  ;;  %v1229_v44 = vmul.f32 %v4950_v6, %v1141_v21 }
 0x1b8   : > { %v3859_v17 = vpop.eup %3858  ;;  %v1013_v16 = vadd.f32 1e-05, %v949_v7  ;;  %v1230_v14 = vmul.f32 %v4950_v6, %v1142_v26 }
 0x1b9   : > { %v1014_v38 = vadd.f32 1e-05, %v950_v61  ;;  %v3861_v34 = vpop.eup %3860  ;;  %v867_v57 = vpop.xlane.xlu1 %866  ;;  %3574 = vmatmul.mubr.bf16.gmra.mrb[28].mxu0 %v1363_v19  ;;  %3654 = vmatmul.mubr.bf16.gmra.mrb[28].mxu1 %v1363_v19  ;;  %v1317_v9 = vadd.f32 %v4961_v22, %v1229_v44  ;;  %v1143_v31 = vmul.f32 %v3859_v17, %v5644_v50 }
 0x1ba   : > { %v869_v30 = vpop.xlane.xlu0 %868  ;;  %3870 = vrsqrt.f32 %v1013_v16  ;;  %v951_v15 = vmul.f32 0.0078125, %v867_v57  ;;  %v1144_v62 = vmul.f32 %v3861_v34, %v5645_v52  ;;  %v1318_v63 = vadd.f32 %v4961_v22, %v1230_v14 }
 0x1bb   : > { %v952_v42 = vmul.f32 0.0078125, %v869_v30  ;;  %3872 = vrsqrt.f32 %v1014_v38  ;;  %v1364_v33 = vpack.c.bf16 %v1317_v9, %v1316_v20  ;;  %v1231_v3 = vmul.f32 %v4950_v6, %v1143_v31  ;;  %v5647_v30 = vld [vmem:[#allocation21_spill] sm:$0xff] }
 0x1bc   : > { %v3863_v25 = vpop.eup %3862  ;;  %v1015_v37 = vadd.f32 1e-05, %v951_v15  ;;  %v1232_v36 = vmul.f32 %v4950_v6, %v1144_v62 }
 0x1bd   : > { %v1016_v18 = vadd.f32 1e-05, %v952_v42  ;;  %v3865_v29 = vpop.eup %3864  ;;  %v871_v28 = vpop.xlane.xlu1 %870  ;;  %3577 = vmatprep.mubr.bf16.mxu0 %v1364_v33  ;;  %3657 = vmatprep.mubr.bf16.mxu1 %v1364_v33  ;;  %v1319_v47 = vadd.f32 %v4961_v22, %v1231_v3  ;;  %v1145_v56 = vmul.f32 %v3863_v25, %v5646_v23 }
 0x1be   : > { %v873_v2 = vpop.xlane.xlu0 %872  ;;  %3874 = vrsqrt.f32 %v1015_v37  ;;  %v953_v46 = vmul.f32 0.0078125, %v871_v28  ;;  %v1146_v10 = vmul.f32 %v3865_v29, %v4676_v45  ;;  %v1320_v40 = vadd.f32 %v4961_v22, %v1232_v36 }
 0x1bf   : > { %v954_v12 = vmul.f32 0.0078125, %v873_v2  ;;  %3876 = vrsqrt.f32 %v1016_v18  ;;  %v1365_v5 = vpack.c.bf16 %v1319_v47, %v1318_v63  ;;  %v1233_v41 = vmul.f32 %v4950_v6, %v1145_v56  ;;  %v5649_v2 = vld [vmem:[#allocation23_spill] sm:$0xff] }
 0x1c0   : > { %v3867_v58 = vpop.eup %3866  ;;  %v1017_v48 = vadd.f32 1e-05, %v953_v46  ;;  %v1234_v4 = vmul.f32 %v4950_v6, %v1146_v10 }
 0x1c1   : > { %v1018_v13 = vadd.f32 1e-05, %v954_v12  ;;  %v3869_v49 = vpop.eup %3868  ;;  %v875_v54 = vpop.xlane.xlu1 %874  ;;  %3578 = vmatmul.mubr.bf16.gmra.mrb[32].mxu0 %v1365_v5  ;;  %3658 = vmatmul.mubr.bf16.gmra.mrb[32].mxu1 %v1365_v5  ;;  %v1321_v21 = vadd.f32 %v4961_v22, %v1233_v41  ;;  %v1147_v45 = vmul.f32 %v3867_v58, %v4684_v32 }
 0x1c2   : > { %v877_v35 = vpop.xlane.xlu0 %876  ;;  %3878 = vrsqrt.f32 %v1017_v48  ;;  %v955_v55 = vmul.f32 0.0078125, %v875_v54  ;;  %v1148_v19 = vmul.f32 %v3869_v49, %v4688_v51  ;;  %v1322_v38 = vadd.f32 %v4961_v22, %v1234_v4  ;;  %v5648_v51 = vld [vmem:[#allocation22_spill] sm:$0xff] }
 0x1c3   : > { %v956_v7 = vmul.f32 0.0078125, %v877_v35  ;;  %3880 = vrsqrt.f32 %v1018_v13  ;;  %v1366_v61 = vpack.c.bf16 %v1321_v21, %v1320_v40  ;;  %v1235_v26 = vmul.f32 %v4950_v6, %v1147_v45 }
 0x1c4   : > { %v3871_v44 = vpop.eup %3870  ;;  %v1019_v17 = vadd.f32 1e-05, %v955_v55  ;;  %v1236_v9 = vmul.f32 %v4950_v6, %v1148_v19 }
 0x1c5   : > { %v1020_v16 = vadd.f32 1e-05, %v956_v7  ;;  %v3873_v14 = vpop.eup %3872  ;;  %v879_v34 = vpop.xlane.xlu1 %878  ;;  %3581 = vmatprep.mubr.bf16.mxu0 %v1366_v61  ;;  %3661 = vmatprep.mubr.bf16.mxu1 %v1366_v61  ;;  %v1323_v32 = vadd.f32 %v4961_v22, %v1235_v26  ;;  %v1149_v20 = vmul.f32 %v3871_v44, %v5647_v30 }
 0x1c6   : > { %v881_v57 = vpop.xlane.xlu0 %880  ;;  %3882 = vrsqrt.f32 %v1019_v17  ;;  %v957_v50 = vmul.f32 0.0078125, %v879_v34  ;;  %v1150_v15 = vmul.f32 %v3873_v14, %v5648_v51  ;;  %v1324_v29 = vadd.f32 %v4961_v22, %v1236_v9  ;;  %v5650_v14 = vld [vmem:[#allocation24_spill] sm:$0xff]  ;;  %v5651_v9 = vld [vmem:[#allocation25_spill] sm:$0xff] }
 0x1c7   : > { %v958_v31 = vmul.f32 0.0078125, %v881_v57  ;;  %3884 = vrsqrt.f32 %v1020_v16  ;;  %v1367_v42 = vpack.c.bf16 %v1323_v32, %v1322_v38  ;;  %v1237_v33 = vmul.f32 %v4950_v6, %v1149_v20  ;;  %v5008_v32 = vld [vmem:[%s5507_s1 + $0x3] ss:$0 sm:$0xff] }
 0x1c8   : > { %v3875_v3 = vpop.eup %3874  ;;  %v1021_v52 = vadd.f32 1e-05, %v957_v50  ;;  %v1238_v25 = vmul.f32 %v4950_v6, %v1150_v15 }
 0x1c9   : > { %v1022_v62 = vadd.f32 1e-05, %v958_v31  ;;  %v3877_v37 = vpop.eup %3876  ;;  %v883_v18 = vpop.xlane.xlu1 %882  ;;  %3582 = vmatmul.mubr.bf16.gmra.mrb[36].mxu0 %v1367_v42  ;;  %3662 = vmatmul.mubr.bf16.gmra.mrb[36].mxu1 %v1367_v42  ;;  %v1325_v28 = vadd.f32 %v4961_v22, %v1237_v33  ;;  %v1151_v47 = vmul.f32 %v3875_v3, %v5649_v2 }
 0x1ca   : > { %v885_v63 = vpop.xlane.xlu0 %884  ;;  %3886 = vrsqrt.f32 %v1021_v52  ;;  %v959_v23 = vmul.f32 0.0078125, %v883_v18  ;;  %v1152_v12 = vmul.f32 %v3877_v37, %v4712_v1  ;;  %v1326_v58 = vadd.f32 %v4961_v22, %v1238_v25  ;;  %v5017_v25 = vld [vmem:[%s5508_s2 + $0x3] ss:$0 sm:$0xff] }
 0x1cb   : > { %v960_v56 = vmul.f32 0.0078125, %v885_v63  ;;  %3888 = vrsqrt.f32 %v1022_v62  ;;  %v1368_v36 = vpack.c.bf16 %v1325_v28, %v1324_v29  ;;  %v1239_v46 = vmul.f32 %v4950_v6, %v1151_v47 }
 0x1cc   : > { %v3879_v10 = vpop.eup %3878  ;;  %v1023_v5 = vadd.f32 1e-05, %v959_v23  ;;  %v1240_v35 = vmul.f32 %v4950_v6, %v1152_v12 }
 0x1cd   : > { %v1024_v41 = vadd.f32 1e-05, %v960_v56  ;;  %v3881_v48 = vpop.eup %3880  ;;  %v887_v13 = vpop.xlane.xlu1 %886  ;;  %3585 = vmatprep.mubr.bf16.mxu0 %v1368_v36  ;;  %3665 = vmatprep.mubr.bf16.mxu1 %v1368_v36  ;;  %v1327_v49 = vadd.f32 %v4961_v22, %v1239_v46  ;;  %v1153_v54 = vmul.f32 %v3879_v10, %v4720_v8 }
 0x1ce   : > { %v889_v4 = vpop.xlane.xlu0 %888  ;;  %3890 = vrsqrt.f32 %v1023_v5  ;;  %v961_v40 = vmul.f32 0.0078125, %v887_v13  ;;  %v1154_v1 = vmul.f32 %v3881_v48, %v4724_v60  ;;  %v1328_v16 = vadd.f32 %v4961_v22, %v1240_v35  ;;  %v5652_v35 = vld [vmem:[#allocation26_spill] sm:$0xff] }
 0x1cf   : > { %v962_v21 = vmul.f32 0.0078125, %v889_v4  ;;  %3892 = vrsqrt.f32 %v1024_v41  ;;  %v1369_v45 = vpack.c.bf16 %v1327_v49, %v1326_v58  ;;  %v1241_v55 = vmul.f32 %v4950_v6, %v1153_v54 }
 0x1d0   : > { %v3883_v7 = vpop.eup %3882  ;;  %v1025_v61 = vadd.f32 1e-05, %v961_v40  ;;  %v1242_v19 = vmul.f32 %v4950_v6, %v1154_v1 }
 0x1d1   : > { %v1026_v26 = vadd.f32 1e-05, %v962_v21  ;;  %v3885_v44 = vpop.eup %3884  ;;  %v891_v17 = vpop.xlane.xlu1 %890  ;;  %3586 = vmatmul.mubr.bf16.gmra.mrb[40].mxu0 %v1369_v45  ;;  %3666 = vmatmul.mubr.bf16.gmra.mrb[40].mxu1 %v1369_v45  ;;  %v1329_v38 = vadd.f32 %v4961_v22, %v1241_v55  ;;  %v1155_v60 = vmul.f32 %v3883_v7, %v5650_v14  ;;  %v5653_v21 = vld [vmem:[#allocation27_spill] sm:$0xff] }
 0x1d2   : > { %v893_v8 = vpop.xlane.xlu0 %892  ;;  %3894 = vrsqrt.f32 %v1025_v61  ;;  %v963_v34 = vmul.f32 0.0078125, %v891_v17  ;;  %v1156_v50 = vmul.f32 %v3885_v44, %v5651_v9  ;;  %v1330_v42 = vadd.f32 %v4961_v22, %v1242_v19  ;;  %v5654_v19 = vld [vmem:[#allocation28_spill] sm:$0xff]  ;;  %v5656_v9 = vld [vmem:[#allocation30_spill] sm:$0xff] }
 0x1d3   : > { %v964_v57 = vmul.f32 0.0078125, %v893_v8  ;;  %3896 = vrsqrt.f32 %v1026_v26  ;;  %v1370_v30 = vpack.c.bf16 %v1329_v38, %v1328_v16  ;;  %v1243_v20 = vmul.f32 %v4950_v6, %v1155_v60  ;;  %v5655_v8 = vld [vmem:[#allocation29_spill] sm:$0xff] }
 0x1d4   : > { %v3887_v31 = vpop.eup %3886  ;;  %v1027_v51 = vadd.f32 1e-05, %v963_v34  ;;  %v1244_v37 = vmul.f32 %v5008_v32, %v1156_v50 }
 0x1d5   : > { %v1028_v15 = vadd.f32 1e-05, %v964_v57  ;;  %v3889_v33 = vpop.eup %3888  ;;  %v895_v3 = vpop.xlane.xlu1 %894  ;;  %3589 = vmatprep.mubr.bf16.mxu0 %v1370_v30  ;;  %3669 = vmatprep.mubr.bf16.mxu1 %v1370_v30  ;;  %v1331_v62 = vadd.f32 %v4961_v22, %v1243_v20  ;;  %v1157_v6 = vmul.f32 %v3887_v31, %v4742_v24  ;;  %v5657_v31 = vld [vmem:[#allocation31_spill] sm:$0xff] }
 0x1d6   : > { %v897_v52 = vpop.xlane.xlu0 %896  ;;  %3898 = vrsqrt.f32 %v1027_v51  ;;  %v965_v18 = vmul.f32 0.0078125, %v895_v3  ;;  %v1158_v29 = vmul.f32 %v3889_v33, %v4748_v39  ;;  %v1332_v56 = vadd.f32 %v5017_v25, %v1244_v37 }
 0x1d7   : > { %v966_v63 = vmul.f32 0.0078125, %v897_v52  ;;  %3900 = vrsqrt.f32 %v1028_v15  ;;  %v1371_v28 = vpack.c.bf16 %v1331_v62, %v1330_v42  ;;  %v1245_v2 = vmul.f32 %v5008_v32, %v1157_v6  ;;  %v5658_v62 = vld [vmem:[#allocation32_spill] sm:$0xff] }
 0x1d8   : > { %v3891_v47 = vpop.eup %3890  ;;  %v1029_v22 = vadd.f32 1e-05, %v965_v18  ;;  %v1246_v10 = vmul.f32 %v5008_v32, %v1158_v29 }
 0x1d9   : > { %v1030_v23 = vadd.f32 1e-05, %v966_v63  ;;  %v3893_v36 = vpop.eup %3892  ;;  %v899_v46 = vpop.xlane.xlu1 %898  ;;  %3590 = vmatmul.mubr.bf16.gmra.mrb[44].mxu0 %v1371_v28  ;;  %3670 = vmatmul.mubr.bf16.gmra.mrb[44].mxu1 %v1371_v28  ;;  %v1333_v24 = vadd.f32 %v5017_v25, %v1245_v2  ;;  %v1159_v12 = vmul.f32 %v3891_v47, %v4756_v27 }
 0x1da   : > { %3902 = vrsqrt.f32 %v1029_v22  ;;  %v967_v39 = vmul.f32 0.0078125, %v899_v46  ;;  %v1160_v5 = vmul.f32 %v3893_v36, %v4760_v53  ;;  %v1334_v54 = vadd.f32 %v5017_v25, %v1246_v10 }
 0x1db   : > { %3904 = vrsqrt.f32 %v1030_v23  ;;  %v1372_v41 = vpack.c.bf16 %v1333_v24, %v1332_v56  ;;  %v1247_v58 = vmul.f32 %v5008_v32, %v1159_v12 }
 0x1dc   : > { %v3895_v48 = vpop.eup %3894  ;;  %v1031_v13 = vadd.f32 1e-05, %v967_v39  ;;  %v1248_v4 = vmul.f32 %v5008_v32, %v1160_v5 }
 0x1dd   : > { %v3897_v49 = vpop.eup %3896  ;;  %3593 = vmatprep.mubr.bf16.mxu0 %v1372_v41  ;;  %3673 = vmatprep.mubr.bf16.mxu1 %v1372_v41  ;;  %v1335_v27 = vadd.f32 %v5017_v25, %v1247_v58  ;;  %v1161_v40 = vmul.f32 %v3895_v48, %v5652_v35 }
 0x1de   : > { %3906 = vrsqrt.f32 %v1031_v13  ;;  %v1162_v53 = vmul.f32 %v3897_v49, %v5653_v21  ;;  %v1336_v7 = vadd.f32 %v5017_v25, %v1248_v4 }
 0x1df   : > { %v1373_v1 = vpack.c.bf16 %v1335_v27, %v1334_v54  ;;  %v1249_v45 = vmul.f32 %v5008_v32, %v1161_v40 }
 0x1e0   : > { %v3899_v55 = vpop.eup %3898  ;;  %v1250_v17 = vmul.f32 %v5008_v32, %v1162_v53 }
 0x1e1   : > { %v3901_v61 = vpop.eup %3900  ;;  %3594 = vmatmul.mubr.bf16.gmra.mrb[48].mxu0 %v1373_v1  ;;  %3674 = vmatmul.mubr.bf16.gmra.mrb[48].mxu1 %v1373_v1  ;;  %v1337_v26 = vadd.f32 %v5017_v25, %v1249_v45  ;;  %v1163_v44 = vmul.f32 %v3899_v55, %v5654_v19 }
 0x1e2   : > { %v1164_v16 = vmul.f32 %v3901_v61, %v5655_v8  ;;  %v1338_v30 = vadd.f32 %v5017_v25, %v1250_v17  ;;  %v5069_v61 = vld [vmem:[%s5510_s4] ss:$0 sm:$0xff] }
 0x1e3   : > { %v1374_v38 = vpack.c.bf16 %v1337_v26, %v1336_v7  ;;  %v1251_v14 = vmul.f32 %v5008_v32, %v1163_v44 }
 0x1e4   : > { %v3903_v60 = vpop.eup %3902  ;;  %v1252_v34 = vmul.f32 %v5008_v32, %v1164_v16 }
 0x1e5   : > { %v3905_v57 = vpop.eup %3904  ;;  %3597 = vmatprep.mubr.bf16.mxu0 %v1374_v38  ;;  %3677 = vmatprep.mubr.bf16.mxu1 %v1374_v38  ;;  %v1339_v20 = vadd.f32 %v5017_v25, %v1251_v14  ;;  %v1165_v50 = vmul.f32 %v3903_v60, %v5656_v9 }
 0x1e6   : > { %v1166_v51 = vmul.f32 %v3905_v57, %v5657_v31  ;;  %v1340_v3 = vadd.f32 %v5017_v25, %v1252_v34 }
 0x1e7   : > { %v1375_v15 = vpack.c.bf16 %v1339_v20, %v1338_v30  ;;  %v1253_v42 = vmul.f32 %v5008_v32, %v1165_v50 }
 0x1e8   : > { %v3907_v33 = vpop.eup %3906  ;;  %v1254_v37 = vmul.f32 %v5008_v32, %v1166_v51 }
 0x1e9   : > { %3598 = vmatmul.mubr.bf16.gmra.mrb[52].mxu0 %v1375_v15  ;;  %3678 = vmatmul.mubr.bf16.gmra.mrb[52].mxu1 %v1375_v15  ;;  %v1341_v52 = vadd.f32 %v5017_v25, %v1253_v42  ;;  %v1167_v6 = vmul.f32 %v3907_v33, %v5658_v62 }
 0x1ea   : > { %v1342_v29 = vadd.f32 %v5017_v25, %v1254_v37 }
 0x1eb   : > { %v1376_v18 = vpack.c.bf16 %v1341_v52, %v1340_v3  ;;  %v1255_v63 = vmul.f32 %v5008_v32, %v1167_v6 }
 0x1ed   : > { %3601 = vmatprep.mubr.bf16.mxu0 %v1376_v18  ;;  %3681 = vmatprep.mubr.bf16.mxu1 %v1376_v18  ;;  %v1343_v28 = vadd.f32 %v5017_v25, %v1255_v63 }
 0x1ef   : > { %v1377_v2 = vpack.c.bf16 %v1343_v28, %v1342_v29 }
 0x1f1   : > { %3602 = vmatmul.mubr.bf16.gmra.mrb[56].mxu0 %v1377_v2  ;;  %3682 = vmatmul.mubr.bf16.gmra.mrb[56].mxu1 %v1377_v2 }
 0x21e   : > { %v901_v47 = vpop.xlane.xlu0 %900 }
 0x21f   : > { %v968_v22 = vmul.f32 0.0078125, %v901_v47 }
 0x221   : > { %v1032_v23 = vadd.f32 1e-05, %v968_v22  ;;  %v903_v56 = vpop.xlane.xlu1 %902 }
 0x222   : > { %v905_v36 = vpop.xlane.xlu0 %904  ;;  %v969_v46 = vmul.f32 0.0078125, %v903_v56 }
 0x223   : > { %3908 = vrsqrt.f32 %v1032_v23  ;;  %v970_v24 = vmul.f32 0.0078125, %v905_v36 }
 0x224   : > { %v1033_v12 = vadd.f32 1e-05, %v969_v46 }
 0x225   : > { %v1034_v10 = vadd.f32 1e-05, %v970_v24  ;;  %v907_v39 = vpop.xlane.xlu1 %906 }
 0x226   : > { %3910 = vrsqrt.f32 %v1033_v12  ;;  %v971_v5 = vmul.f32 0.0078125, %v907_v39 }
 0x227   : > { %3912 = vrsqrt.f32 %v1034_v10 }
 0x228   : > { %v1035_v41 = vadd.f32 1e-05, %v971_v5 }
 0x22a   : > { %3914 = vrsqrt.f32 %v1035_v41 }
 0x22d   : > { %v3909_v58 = vpop.eup %3908 }
 0x22e   : > { %v1168_v48 = vmul.f32 %v3909_v58, %v4874_v43 }
 0x230   : > { %v3911_v13 = vpop.eup %3910  ;;  %v1256_v54 = vmul.f32 %v5008_v32, %v1168_v48 }
 0x231   : > { %v3913_v4 = vpop.eup %3912  ;;  %v1169_v49 = vmul.f32 %v3911_v13, %v4891_v59 }
 0x232   : > { %v1170_v27 = vmul.f32 %v3913_v4, %v4895_v11  ;;  %v1344_v21 = vadd.f32 %v5017_v25, %v1256_v54 }
 0x233   : > { %v1257_v35 = vmul.f32 %v5008_v32, %v1169_v49 }
 0x234   : > { %v3915_v40 = vpop.eup %3914  ;;  %v1258_v43 = vmul.f32 %v5008_v32, %v1170_v27 }
 0x235   : > { %v1345_v53 = vadd.f32 %v5017_v25, %v1257_v35  ;;  %v1171_v1 = vmul.f32 %v3915_v40, %v4909_v0  ;;  %v5074_v0 = vld [vmem:[%s5510_s4 + $0x1] ss:$0 sm:$0xff] }
 0x236   : > { %v1346_v59 = vadd.f32 %v5017_v25, %v1258_v43 }
 0x237   : > { %v1378_v45 = vpack.c.bf16 %v1345_v53, %v1344_v21  ;;  %v1259_v55 = vmul.f32 %v5008_v32, %v1171_v1 }
 0x239   : > { %3605 = vmatprep.mubr.bf16.mxu0 %v1378_v45  ;;  %3685 = vmatprep.mubr.bf16.mxu1 %v1378_v45  ;;  %v1347_v11 = vadd.f32 %v5017_v25, %v1259_v55 }
 0x23b   : > { %v1379_v7 = vpack.c.bf16 %v1347_v11, %v1346_v59 }
 0x23d   : > { %3606 = vmatmul.mubr.bf16.gmra.mrb[60].mxu0 %v1379_v7  ;;  %3686 = vmatmul.mubr.bf16.gmra.mrb[60].mxu1 %v1379_v7 }
 0x24c   : > { %v3547_v32 = vpop.f32.mrb[0].mxu0  ;;  %v3627_v26 = vpop.f32.mrb[0].mxu1 }
 0x24d   : > { %v1494_v19 = vadd.f32 %v3547_v32, %v5069_v61  ;;  %v2177_v25 = vadd.f32 %v3627_v26, %v5074_v0  ;;  %v1485_v44 = vpop.f32.mrb[1].mxu0  ;;  %v2168_v17 = vpop.f32.mrb[1].mxu1 }
 0x24e   : > { %v1486_v8 = vadd.f32 %v5069_v61, %v1485_v44  ;;  %v2169_v16 = vadd.f32 %v5074_v0, %v2168_v17  ;;  %v3548_v38 = vpop.f32.mrb[2].mxu0  ;;  %v3628_v14 = vpop.f32.mrb[2].mxu1 }
 0x24f   : > { %v3162_v60 = vpack.c.bf16 %v1494_v19, %v1494_v19  ;;  %v3226_v34 = vpack.c.bf16 %v2177_v25, %v2177_v25  ;;  %v1497_v57 = vadd.f32 %v3548_v38, %v5069_v61  ;;  %v2180_v30 = vadd.f32 %v3628_v14, %v5074_v0  ;;  %v1488_v20 = vpop.f32.mrb[3].mxu0  ;;  %v2171_v9 = vpop.f32.mrb[3].mxu1 }
 0x250   : > { %v3160_v50 = vpack.c.bf16 %v1486_v8, %v1486_v8  ;;  %v3224_v31 = vpack.c.bf16 %v2169_v16, %v2169_v16  ;;  %v1489_v51 = vadd.f32 %v5069_v61, %v1488_v20  ;;  %v2172_v15 = vadd.f32 %v5074_v0, %v2171_v9 }
 0x251   : > { %1999 = vst.msk [vmem:[%s5085_s12 + $0x10] sm:$0xf] %vm1996_vm0, %v3162_v60  ;;  %3090 = vst.msk [vmem:[%s5085_s12 + $0x18] sm:$0xf] %vm1996_vm0, %v3226_v34  ;;  %v3163_v42 = vpack.c.bf16 %v1497_v57, %v1497_v57  ;;  %v3227_v33 = vpack.c.bf16 %v2180_v30, %v2180_v30 }
 0x252   : > { %1997 = vst.msk [vmem:[%s5085_s12] sm:$0xf] %vm1996_vm0, %v3160_v50  ;;  %3088 = vst.msk [vmem:[%s5085_s12 + $0x8] sm:$0xf] %vm1996_vm0, %v3224_v31  ;;  %v3161_v3 = vpack.c.bf16 %v1489_v51, %v1489_v51  ;;  %v3225_v52 = vpack.c.bf16 %v2172_v15, %v2172_v15 }
 0x253   : > { %2000 = vst.msk [vmem:[%s5085_s12 + $0x14] sm:$0xf] %vm1996_vm0, %v3163_v42  ;;  %3091 = vst.msk [vmem:[%s5085_s12 + $0x1c] sm:$0xf] %vm1996_vm0, %v3227_v33 }
 0x254   : > { %1998 = vst.msk [vmem:[%s5085_s12 + $0x4] sm:$0xf] %vm1996_vm0, %v3161_v3  ;;  %3089 = vst.msk [vmem:[%s5085_s12 + $0xc] sm:$0xf] %vm1996_vm0, %v3225_v52  ;;  %v3551_v62 = vpop.f32.mrb[4].mxu0  ;;  %v3631_v6 = vpop.f32.mrb[4].mxu1 }
 0x255   : > { %v1510_v37 = vadd.f32 %v3551_v62, %v5069_v61  ;;  %v2193_v18 = vadd.f32 %v3631_v6, %v5074_v0  ;;  %v1501_v63 = vpop.f32.mrb[5].mxu0  ;;  %v2184_v29 = vpop.f32.mrb[5].mxu1 }
 0x256   : > { %v1502_v28 = vadd.f32 %v5069_v61, %v1501_v63  ;;  %v2185_v2 = vadd.f32 %v5074_v0, %v2184_v29  ;;  %v3552_v47 = vpop.f32.mrb[6].mxu0  ;;  %v3632_v22 = vpop.f32.mrb[6].mxu1 }
 0x257   : > { %v3166_v23 = vpack.c.bf16 %v1510_v37, %v1510_v37  ;;  %v3230_v56 = vpack.c.bf16 %v2193_v18, %v2193_v18  ;;  %v1513_v36 = vadd.f32 %v3552_v47, %v5069_v61  ;;  %v2196_v46 = vadd.f32 %v3632_v22, %v5074_v0  ;;  %v1504_v24 = vpop.f32.mrb[7].mxu0  ;;  %v2187_v12 = vpop.f32.mrb[7].mxu1 }
 0x258   : > { %v3164_v10 = vpack.c.bf16 %v1502_v28, %v1502_v28  ;;  %v3228_v39 = vpack.c.bf16 %v2185_v2, %v2185_v2  ;;  %v1505_v5 = vadd.f32 %v5069_v61, %v1504_v24  ;;  %v2188_v41 = vadd.f32 %v5074_v0, %v2187_v12 }
 0x259   : > { %2003 = vst.msk [vmem:[%s5085_s12 + $0x30] sm:$0xf] %vm1996_vm0, %v3166_v23  ;;  %3094 = vst.msk [vmem:[%s5085_s12 + $0x38] sm:$0xf] %vm1996_vm0, %v3230_v56  ;;  %v3167_v58 = vpack.c.bf16 %v1513_v36, %v1513_v36  ;;  %v3231_v48 = vpack.c.bf16 %v2196_v46, %v2196_v46 }
 0x25a   : > { %2001 = vst.msk [vmem:[%s5085_s12 + $0x20] sm:$0xf] %vm1996_vm0, %v3164_v10  ;;  %3092 = vst.msk [vmem:[%s5085_s12 + $0x28] sm:$0xf] %vm1996_vm0, %v3228_v39  ;;  %v3165_v13 = vpack.c.bf16 %v1505_v5, %v1505_v5  ;;  %v3229_v4 = vpack.c.bf16 %v2188_v41, %v2188_v41 }
 0x25b   : > { %2004 = vst.msk [vmem:[%s5085_s12 + $0x34] sm:$0xf] %vm1996_vm0, %v3167_v58  ;;  %3095 = vst.msk [vmem:[%s5085_s12 + $0x3c] sm:$0xf] %vm1996_vm0, %v3231_v48 }
 0x25c   : > { %2002 = vst.msk [vmem:[%s5085_s12 + $0x24] sm:$0xf] %vm1996_vm0, %v3165_v13  ;;  %3093 = vst.msk [vmem:[%s5085_s12 + $0x2c] sm:$0xf] %vm1996_vm0, %v3229_v4  ;;  %v3555_v49 = vpop.f32.mrb[8].mxu0  ;;  %v3635_v54 = vpop.f32.mrb[8].mxu1 }
 0x25d   : > { %v1526_v27 = vadd.f32 %v3555_v49, %v5069_v61  ;;  %v2209_v35 = vadd.f32 %v3635_v54, %v5074_v0  ;;  %v1517_v40 = vpop.f32.mrb[9].mxu0  ;;  %v2200_v21 = vpop.f32.mrb[9].mxu1 }
 0x25e   : > { %v1518_v53 = vadd.f32 %v5069_v61, %v1517_v40  ;;  %v2201_v1 = vadd.f32 %v5074_v0, %v2200_v21  ;;  %v3556_v43 = vpop.f32.mrb[10].mxu0  ;;  %v3636_v45 = vpop.f32.mrb[10].mxu1 }
 0x25f   : > { %v3170_v55 = vpack.c.bf16 %v1526_v27, %v1526_v27  ;;  %v3234_v59 = vpack.c.bf16 %v2209_v35, %v2209_v35  ;;  %v1529_v11 = vadd.f32 %v3556_v43, %v5069_v61  ;;  %v2212_v7 = vadd.f32 %v3636_v45, %v5074_v0  ;;  %v1520_v32 = vpop.f32.mrb[11].mxu0  ;;  %v2203_v26 = vpop.f32.mrb[11].mxu1 }
 0x260   : > { %v3168_v19 = vpack.c.bf16 %v1518_v53, %v1518_v53  ;;  %v3232_v25 = vpack.c.bf16 %v2201_v1, %v2201_v1  ;;  %v1521_v44 = vadd.f32 %v5069_v61, %v1520_v32  ;;  %v2204_v17 = vadd.f32 %v5074_v0, %v2203_v26 }
 0x261   : > { %2007 = vst.msk [vmem:[%s5085_s12 + $0x50] sm:$0xf] %vm1996_vm0, %v3170_v55  ;;  %3098 = vst.msk [vmem:[%s5085_s12 + $0x58] sm:$0xf] %vm1996_vm0, %v3234_v59  ;;  %v3171_v8 = vpack.c.bf16 %v1529_v11, %v1529_v11  ;;  %v3235_v16 = vpack.c.bf16 %v2212_v7, %v2212_v7 }
 0x262   : > { %2005 = vst.msk [vmem:[%s5085_s12 + $0x40] sm:$0xf] %vm1996_vm0, %v3168_v19  ;;  %3096 = vst.msk [vmem:[%s5085_s12 + $0x48] sm:$0xf] %vm1996_vm0, %v3232_v25  ;;  %v3169_v38 = vpack.c.bf16 %v1521_v44, %v1521_v44  ;;  %v3233_v14 = vpack.c.bf16 %v2204_v17, %v2204_v17 }
 0x263   : > { %2008 = vst.msk [vmem:[%s5085_s12 + $0x54] sm:$0xf] %vm1996_vm0, %v3171_v8  ;;  %3099 = vst.msk [vmem:[%s5085_s12 + $0x5c] sm:$0xf] %vm1996_vm0, %v3235_v16 }
 0x264   : > { %2006 = vst.msk [vmem:[%s5085_s12 + $0x44] sm:$0xf] %vm1996_vm0, %v3169_v38  ;;  %3097 = vst.msk [vmem:[%s5085_s12 + $0x4c] sm:$0xf] %vm1996_vm0, %v3233_v14  ;;  %v3559_v60 = vpop.f32.mrb[12].mxu0 }
 0x265   : > { %v3639_v34 = vpop.f32.mrb[12].mxu1  ;;  %v1542_v57 = vadd.f32 %v3559_v60, %v5069_v61  ;;  %v1533_v20 = vpop.f32.mrb[13].mxu0 }
 0x266   : > { %v2225_v30 = vadd.f32 %v3639_v34, %v5074_v0  ;;  %v2216_v9 = vpop.f32.mrb[13].mxu1  ;;  %v1534_v50 = vadd.f32 %v5069_v61, %v1533_v20  ;;  %v3560_v51 = vpop.f32.mrb[14].mxu0 }
 0x267   : > { %v2217_v31 = vadd.f32 %v5074_v0, %v2216_v9  ;;  %v3640_v15 = vpop.f32.mrb[14].mxu1  ;;  %v3174_v42 = vpack.c.bf16 %v1542_v57, %v1542_v57  ;;  %v1545_v3 = vadd.f32 %v3560_v51, %v5069_v61  ;;  %v1536_v62 = vpop.f32.mrb[15].mxu0 }
 0x268   : > { %v3238_v33 = vpack.c.bf16 %v2225_v30, %v2225_v30  ;;  %v2228_v52 = vadd.f32 %v3640_v15, %v5074_v0  ;;  %v2219_v6 = vpop.f32.mrb[15].mxu1  ;;  %v3172_v37 = vpack.c.bf16 %v1534_v50, %v1534_v50  ;;  %v1537_v63 = vadd.f32 %v5069_v61, %v1536_v62 }
 0x269   : > { %v3236_v18 = vpack.c.bf16 %v2217_v31, %v2217_v31  ;;  %v2220_v29 = vadd.f32 %v5074_v0, %v2219_v6  ;;  %2011 = vst.msk [vmem:[%s5085_s12 + $0x70] sm:$0xf] %vm1996_vm0, %v3174_v42  ;;  %v3175_v28 = vpack.c.bf16 %v1545_v3, %v1545_v3 }
 0x26a   : > { %3102 = vst.msk [vmem:[%s5085_s12 + $0x78] sm:$0xf] %vm1996_vm0, %v3238_v33  ;;  %v3239_v2 = vpack.c.bf16 %v2228_v52, %v2228_v52  ;;  %2009 = vst.msk [vmem:[%s5085_s12 + $0x60] sm:$0xf] %vm1996_vm0, %v3172_v37  ;;  %v3173_v47 = vpack.c.bf16 %v1537_v63, %v1537_v63 }
 0x26b   : > { %3100 = vst.msk [vmem:[%s5085_s12 + $0x68] sm:$0xf] %vm1996_vm0, %v3236_v18  ;;  %v3237_v22 = vpack.c.bf16 %v2220_v29, %v2220_v29  ;;  %2012 = vst.msk [vmem:[%s5085_s12 + $0x74] sm:$0xf] %vm1996_vm0, %v3175_v28 }
 0x26c   : > { %3103 = vst.msk [vmem:[%s5085_s12 + $0x7c] sm:$0xf] %vm1996_vm0, %v3239_v2  ;;  %2010 = vst.msk [vmem:[%s5085_s12 + $0x64] sm:$0xf] %vm1996_vm0, %v3173_v47  ;;  %v3563_v23 = vpop.f32.mrb[16].mxu0 }
 0x26d   : > { %3101 = vst.msk [vmem:[%s5085_s12 + $0x6c] sm:$0xf] %vm1996_vm0, %v3237_v22  ;;  %v3643_v56 = vpop.f32.mrb[16].mxu1  ;;  %v1558_v36 = vadd.f32 %v3563_v23, %v5069_v61  ;;  %v1549_v24 = vpop.f32.mrb[17].mxu0 }
 0x26e   : > { %v2241_v46 = vadd.f32 %v3643_v56, %v5074_v0  ;;  %v2232_v12 = vpop.f32.mrb[17].mxu1  ;;  %v1550_v10 = vadd.f32 %v5069_v61, %v1549_v24  ;;  %v3564_v5 = vpop.f32.mrb[18].mxu0 }
 0x26f   : > { %v2233_v39 = vadd.f32 %v5074_v0, %v2232_v12  ;;  %v3644_v41 = vpop.f32.mrb[18].mxu1  ;;  %v3178_v58 = vpack.c.bf16 %v1558_v36, %v1558_v36  ;;  %v1561_v13 = vadd.f32 %v3564_v5, %v5069_v61  ;;  %v1552_v49 = vpop.f32.mrb[19].mxu0 }
 0x270   : > { %v3242_v48 = vpack.c.bf16 %v2241_v46, %v2241_v46  ;;  %v2244_v4 = vadd.f32 %v3644_v41, %v5074_v0  ;;  %v2235_v54 = vpop.f32.mrb[19].mxu1  ;;  %v3176_v27 = vpack.c.bf16 %v1550_v10, %v1550_v10  ;;  %v1553_v40 = vadd.f32 %v5069_v61, %v1552_v49 }
 0x271   : > { %v3240_v35 = vpack.c.bf16 %v2233_v39, %v2233_v39  ;;  %v2236_v21 = vadd.f32 %v5074_v0, %v2235_v54  ;;  %2015 = vst.msk [vmem:[%s5085_s12 + $0x90] sm:$0xf] %vm1996_vm0, %v3178_v58  ;;  %v3179_v53 = vpack.c.bf16 %v1561_v13, %v1561_v13 }
 0x272   : > { %3106 = vst.msk [vmem:[%s5085_s12 + $0x98] sm:$0xf] %vm1996_vm0, %v3242_v48  ;;  %v3243_v1 = vpack.c.bf16 %v2244_v4, %v2244_v4  ;;  %2013 = vst.msk [vmem:[%s5085_s12 + $0x80] sm:$0xf] %vm1996_vm0, %v3176_v27  ;;  %v3177_v43 = vpack.c.bf16 %v1553_v40, %v1553_v40 }
 0x273   : > { %3104 = vst.msk [vmem:[%s5085_s12 + $0x88] sm:$0xf] %vm1996_vm0, %v3240_v35  ;;  %v3241_v45 = vpack.c.bf16 %v2236_v21, %v2236_v21  ;;  %2016 = vst.msk [vmem:[%s5085_s12 + $0x94] sm:$0xf] %vm1996_vm0, %v3179_v53 }
 0x274   : > { %3107 = vst.msk [vmem:[%s5085_s12 + $0x9c] sm:$0xf] %vm1996_vm0, %v3243_v1  ;;  %2014 = vst.msk [vmem:[%s5085_s12 + $0x84] sm:$0xf] %vm1996_vm0, %v3177_v43  ;;  %v3567_v55 = vpop.f32.mrb[20].mxu0 }
 0x275   : > { %3105 = vst.msk [vmem:[%s5085_s12 + $0x8c] sm:$0xf] %vm1996_vm0, %v3241_v45  ;;  %v3647_v59 = vpop.f32.mrb[20].mxu1  ;;  %v1574_v11 = vadd.f32 %v3567_v55, %v5069_v61  ;;  %v1565_v32 = vpop.f32.mrb[21].mxu0 }
 0x276   : > { %v2257_v7 = vadd.f32 %v3647_v59, %v5074_v0  ;;  %v2248_v26 = vpop.f32.mrb[21].mxu1  ;;  %v1566_v19 = vadd.f32 %v5069_v61, %v1565_v32  ;;  %v3568_v44 = vpop.f32.mrb[22].mxu0 }
 0x277   : > { %v2249_v25 = vadd.f32 %v5074_v0, %v2248_v26  ;;  %v3648_v17 = vpop.f32.mrb[22].mxu1  ;;  %v3182_v8 = vpack.c.bf16 %v1574_v11, %v1574_v11  ;;  %v1577_v38 = vadd.f32 %v3568_v44, %v5069_v61  ;;  %v1568_v60 = vpop.f32.mrb[23].mxu0 }
 0x278   : > { %v3246_v16 = vpack.c.bf16 %v2257_v7, %v2257_v7  ;;  %v2260_v14 = vadd.f32 %v3648_v17, %v5074_v0  ;;  %v2251_v34 = vpop.f32.mrb[23].mxu1  ;;  %v3180_v57 = vpack.c.bf16 %v1566_v19, %v1566_v19  ;;  %v1569_v20 = vadd.f32 %v5069_v61, %v1568_v60 }
 0x279   : > { %v3244_v30 = vpack.c.bf16 %v2249_v25, %v2249_v25  ;;  %v2252_v9 = vadd.f32 %v5074_v0, %v2251_v34  ;;  %2019 = vst.msk [vmem:[%s5085_s12 + $0xb0] sm:$0xf] %vm1996_vm0, %v3182_v8  ;;  %v3183_v50 = vpack.c.bf16 %v1577_v38, %v1577_v38 }
 0x27a   : > { %3110 = vst.msk [vmem:[%s5085_s12 + $0xb8] sm:$0xf] %vm1996_vm0, %v3246_v16  ;;  %v3247_v31 = vpack.c.bf16 %v2260_v14, %v2260_v14  ;;  %2017 = vst.msk [vmem:[%s5085_s12 + $0xa0] sm:$0xf] %vm1996_vm0, %v3180_v57  ;;  %v3181_v51 = vpack.c.bf16 %v1569_v20, %v1569_v20 }
 0x27b   : > { %3108 = vst.msk [vmem:[%s5085_s12 + $0xa8] sm:$0xf] %vm1996_vm0, %v3244_v30  ;;  %v3245_v15 = vpack.c.bf16 %v2252_v9, %v2252_v9  ;;  %2020 = vst.msk [vmem:[%s5085_s12 + $0xb4] sm:$0xf] %vm1996_vm0, %v3183_v50 }
 0x27c   : > { %3111 = vst.msk [vmem:[%s5085_s12 + $0xbc] sm:$0xf] %vm1996_vm0, %v3247_v31  ;;  %2018 = vst.msk [vmem:[%s5085_s12 + $0xa4] sm:$0xf] %vm1996_vm0, %v3181_v51 }
 0x27d   : > { %3109 = vst.msk [vmem:[%s5085_s12 + $0xac] sm:$0xf] %vm1996_vm0, %v3245_v15 }
 0x284   : > { %v3571_v42 = vpop.f32.mrb[24].mxu0  ;;  %v3651_v33 = vpop.f32.mrb[24].mxu1 }
 0x285   : > { %v1590_v3 = vadd.f32 %v3571_v42, %v5069_v61  ;;  %v2273_v52 = vadd.f32 %v3651_v33, %v5074_v0  ;;  %v1581_v62 = vpop.f32.mrb[25].mxu0  ;;  %v2264_v6 = vpop.f32.mrb[25].mxu1 }
 0x286   : > { %v1582_v37 = vadd.f32 %v5069_v61, %v1581_v62  ;;  %v2265_v18 = vadd.f32 %v5074_v0, %v2264_v6  ;;  %v3572_v63 = vpop.f32.mrb[26].mxu0  ;;  %v3652_v29 = vpop.f32.mrb[26].mxu1 }
 0x287   : > { %v3186_v28 = vpack.c.bf16 %v1590_v3, %v1590_v3  ;;  %v3250_v2 = vpack.c.bf16 %v2273_v52, %v2273_v52  ;;  %v1593_v47 = vadd.f32 %v3572_v63, %v5069_v61  ;;  %v2276_v22 = vadd.f32 %v3652_v29, %v5074_v0  ;;  %v1584_v23 = vpop.f32.mrb[27].mxu0  ;;  %v2267_v56 = vpop.f32.mrb[27].mxu1 }
 0x288   : > { %v3184_v36 = vpack.c.bf16 %v1582_v37, %v1582_v37  ;;  %v3248_v46 = vpack.c.bf16 %v2265_v18, %v2265_v18  ;;  %v1585_v24 = vadd.f32 %v5069_v61, %v1584_v23  ;;  %v2268_v12 = vadd.f32 %v5074_v0, %v2267_v56 }
 0x289   : > { %2023 = vst.msk [vmem:[%s5085_s12 + $0xd0] sm:$0xf] %vm1996_vm0, %v3186_v28  ;;  %3114 = vst.msk [vmem:[%s5085_s12 + $0xd8] sm:$0xf] %vm1996_vm0, %v3250_v2  ;;  %v3187_v10 = vpack.c.bf16 %v1593_v47, %v1593_v47  ;;  %v3251_v39 = vpack.c.bf16 %v2276_v22, %v2276_v22 }
 0x28a   : > { %2021 = vst.msk [vmem:[%s5085_s12 + $0xc0] sm:$0xf] %vm1996_vm0, %v3184_v36  ;;  %3112 = vst.msk [vmem:[%s5085_s12 + $0xc8] sm:$0xf] %vm1996_vm0, %v3248_v46  ;;  %v3185_v5 = vpack.c.bf16 %v1585_v24, %v1585_v24  ;;  %v3249_v41 = vpack.c.bf16 %v2268_v12, %v2268_v12 }
 0x28b   : > { %2024 = vst.msk [vmem:[%s5085_s12 + $0xd4] sm:$0xf] %vm1996_vm0, %v3187_v10  ;;  %3115 = vst.msk [vmem:[%s5085_s12 + $0xdc] sm:$0xf] %vm1996_vm0, %v3251_v39 }
 0x28c   : > { %2022 = vst.msk [vmem:[%s5085_s12 + $0xc4] sm:$0xf] %vm1996_vm0, %v3185_v5  ;;  %3113 = vst.msk [vmem:[%s5085_s12 + $0xcc] sm:$0xf] %vm1996_vm0, %v3249_v41  ;;  %v3575_v58 = vpop.f32.mrb[28].mxu0  ;;  %v3655_v48 = vpop.f32.mrb[28].mxu1 }
 0x28d   : > { %v1606_v13 = vadd.f32 %v3575_v58, %v5069_v61  ;;  %v2289_v4 = vadd.f32 %v3655_v48, %v5074_v0  ;;  %v1597_v49 = vpop.f32.mrb[29].mxu0  ;;  %v2280_v54 = vpop.f32.mrb[29].mxu1 }
 0x28e   : > { %v1598_v27 = vadd.f32 %v5069_v61, %v1597_v49  ;;  %v2281_v35 = vadd.f32 %v5074_v0, %v2280_v54  ;;  %v3576_v40 = vpop.f32.mrb[30].mxu0  ;;  %v3656_v21 = vpop.f32.mrb[30].mxu1 }
 0x28f   : > { %v3190_v53 = vpack.c.bf16 %v1606_v13, %v1606_v13  ;;  %v3254_v1 = vpack.c.bf16 %v2289_v4, %v2289_v4  ;;  %v1609_v43 = vadd.f32 %v3576_v40, %v5069_v61  ;;  %v2292_v45 = vadd.f32 %v3656_v21, %v5074_v0  ;;  %v1600_v55 = vpop.f32.mrb[31].mxu0  ;;  %v2283_v59 = vpop.f32.mrb[31].mxu1 }
 0x290   : > { %v3188_v11 = vpack.c.bf16 %v1598_v27, %v1598_v27  ;;  %v3252_v7 = vpack.c.bf16 %v2281_v35, %v2281_v35  ;;  %v1601_v32 = vadd.f32 %v5069_v61, %v1600_v55  ;;  %v2284_v26 = vadd.f32 %v5074_v0, %v2283_v59 }
 0x291   : > { %2027 = vst.msk [vmem:[%s5085_s12 + $0xf0] sm:$0xf] %vm1996_vm0, %v3190_v53  ;;  %3118 = vst.msk [vmem:[%s5085_s12 + $0xf8] sm:$0xf] %vm1996_vm0, %v3254_v1  ;;  %v3191_v19 = vpack.c.bf16 %v1609_v43, %v1609_v43  ;;  %v3255_v25 = vpack.c.bf16 %v2292_v45, %v2292_v45 }
 0x292   : > { %2025 = vst.msk [vmem:[%s5085_s12 + $0xe0] sm:$0xf] %vm1996_vm0, %v3188_v11  ;;  %3116 = vst.msk [vmem:[%s5085_s12 + $0xe8] sm:$0xf] %vm1996_vm0, %v3252_v7  ;;  %v3189_v44 = vpack.c.bf16 %v1601_v32, %v1601_v32  ;;  %v3253_v17 = vpack.c.bf16 %v2284_v26, %v2284_v26 }
 0x293   : > { %2028 = vst.msk [vmem:[%s5085_s12 + $0xf4] sm:$0xf] %vm1996_vm0, %v3191_v19  ;;  %3119 = vst.msk [vmem:[%s5085_s12 + $0xfc] sm:$0xf] %vm1996_vm0, %v3255_v25 }
 0x294   : > { %2026 = vst.msk [vmem:[%s5085_s12 + $0xe4] sm:$0xf] %vm1996_vm0, %v3189_v44  ;;  %3117 = vst.msk [vmem:[%s5085_s12 + $0xec] sm:$0xf] %vm1996_vm0, %v3253_v17  ;;  %v3579_v8 = vpop.f32.mrb[32].mxu0  ;;  %v3659_v16 = vpop.f32.mrb[32].mxu1 }
 0x295   : > { %v1622_v38 = vadd.f32 %v3579_v8, %v5069_v61  ;;  %v2305_v14 = vadd.f32 %v3659_v16, %v5074_v0  ;;  %v1613_v60 = vpop.f32.mrb[33].mxu0  ;;  %v2296_v34 = vpop.f32.mrb[33].mxu1 }
 0x296   : > { %v1614_v57 = vadd.f32 %v5069_v61, %v1613_v60  ;;  %v2297_v30 = vadd.f32 %v5074_v0, %v2296_v34  ;;  %v3580_v20 = vpop.f32.mrb[34].mxu0  ;;  %v3660_v9 = vpop.f32.mrb[34].mxu1 }
 0x297   : > { %v3194_v50 = vpack.c.bf16 %v1622_v38, %v1622_v38  ;;  %v3258_v31 = vpack.c.bf16 %v2305_v14, %v2305_v14  ;;  %v1625_v51 = vadd.f32 %v3580_v20, %v5069_v61  ;;  %v2308_v15 = vadd.f32 %v3660_v9, %v5074_v0  ;;  %v1616_v42 = vpop.f32.mrb[35].mxu0  ;;  %v2299_v33 = vpop.f32.mrb[35].mxu1 }
 0x298   : > { %v3192_v3 = vpack.c.bf16 %v1614_v57, %v1614_v57  ;;  %v3256_v52 = vpack.c.bf16 %v2297_v30, %v2297_v30  ;;  %v1617_v62 = vadd.f32 %v5069_v61, %v1616_v42  ;;  %v2300_v6 = vadd.f32 %v5074_v0, %v2299_v33 }
 0x299   : > { %2031 = vst.msk [vmem:[%s5085_s12 + $0x110] sm:$0xf] %vm1996_vm0, %v3194_v50  ;;  %3122 = vst.msk [vmem:[%s5085_s12 + $0x118] sm:$0xf] %vm1996_vm0, %v3258_v31  ;;  %v3195_v37 = vpack.c.bf16 %v1625_v51, %v1625_v51  ;;  %v3259_v18 = vpack.c.bf16 %v2308_v15, %v2308_v15 }
 0x29a   : > { %2029 = vst.msk [vmem:[%s5085_s12 + $0x100] sm:$0xf] %vm1996_vm0, %v3192_v3  ;;  %3120 = vst.msk [vmem:[%s5085_s12 + $0x108] sm:$0xf] %vm1996_vm0, %v3256_v52  ;;  %v3193_v63 = vpack.c.bf16 %v1617_v62, %v1617_v62  ;;  %v3257_v29 = vpack.c.bf16 %v2300_v6, %v2300_v6 }
 0x29b   : > { %2032 = vst.msk [vmem:[%s5085_s12 + $0x114] sm:$0xf] %vm1996_vm0, %v3195_v37  ;;  %3123 = vst.msk [vmem:[%s5085_s12 + $0x11c] sm:$0xf] %vm1996_vm0, %v3259_v18 }
 0x29c   : > { %2030 = vst.msk [vmem:[%s5085_s12 + $0x104] sm:$0xf] %vm1996_vm0, %v3193_v63  ;;  %3121 = vst.msk [vmem:[%s5085_s12 + $0x10c] sm:$0xf] %vm1996_vm0, %v3257_v29  ;;  %v3583_v28 = vpop.f32.mrb[36].mxu0  ;;  %v3663_v2 = vpop.f32.mrb[36].mxu1 }
 0x29d   : > { %v1638_v47 = vadd.f32 %v3583_v28, %v5069_v61  ;;  %v2321_v22 = vadd.f32 %v3663_v2, %v5074_v0  ;;  %v1629_v23 = vpop.f32.mrb[37].mxu0  ;;  %v2312_v56 = vpop.f32.mrb[37].mxu1 }
 0x29e   : > { %v1630_v36 = vadd.f32 %v5069_v61, %v1629_v23  ;;  %v2313_v46 = vadd.f32 %v5074_v0, %v2312_v56  ;;  %v3584_v24 = vpop.f32.mrb[38].mxu0  ;;  %v3664_v12 = vpop.f32.mrb[38].mxu1 }
 0x29f   : > { %v3198_v10 = vpack.c.bf16 %v1638_v47, %v1638_v47  ;;  %v3262_v39 = vpack.c.bf16 %v2321_v22, %v2321_v22  ;;  %v1641_v5 = vadd.f32 %v3584_v24, %v5069_v61  ;;  %v2324_v41 = vadd.f32 %v3664_v12, %v5074_v0  ;;  %v1632_v58 = vpop.f32.mrb[39].mxu0  ;;  %v2315_v48 = vpop.f32.mrb[39].mxu1 }
 0x2a0   : > { %v3196_v13 = vpack.c.bf16 %v1630_v36, %v1630_v36  ;;  %v3260_v4 = vpack.c.bf16 %v2313_v46, %v2313_v46  ;;  %v1633_v49 = vadd.f32 %v5069_v61, %v1632_v58  ;;  %v2316_v54 = vadd.f32 %v5074_v0, %v2315_v48 }
 0x2a1   : > { %2035 = vst.msk [vmem:[%s5085_s12 + $0x130] sm:$0xf] %vm1996_vm0, %v3198_v10  ;;  %3126 = vst.msk [vmem:[%s5085_s12 + $0x138] sm:$0xf] %vm1996_vm0, %v3262_v39  ;;  %v3199_v27 = vpack.c.bf16 %v1641_v5, %v1641_v5  ;;  %v3263_v35 = vpack.c.bf16 %v2324_v41, %v2324_v41 }
 0x2a2   : > { %2033 = vst.msk [vmem:[%s5085_s12 + $0x120] sm:$0xf] %vm1996_vm0, %v3196_v13  ;;  %3124 = vst.msk [vmem:[%s5085_s12 + $0x128] sm:$0xf] %vm1996_vm0, %v3260_v4  ;;  %v3197_v40 = vpack.c.bf16 %v1633_v49, %v1633_v49  ;;  %v3261_v21 = vpack.c.bf16 %v2316_v54, %v2316_v54 }
 0x2a3   : > { %2036 = vst.msk [vmem:[%s5085_s12 + $0x134] sm:$0xf] %vm1996_vm0, %v3199_v27  ;;  %3127 = vst.msk [vmem:[%s5085_s12 + $0x13c] sm:$0xf] %vm1996_vm0, %v3263_v35 }
 0x2a4   : > { %2034 = vst.msk [vmem:[%s5085_s12 + $0x124] sm:$0xf] %vm1996_vm0, %v3197_v40  ;;  %3125 = vst.msk [vmem:[%s5085_s12 + $0x12c] sm:$0xf] %vm1996_vm0, %v3261_v21  ;;  %v3587_v53 = vpop.f32.mrb[40].mxu0  ;;  %v3667_v1 = vpop.f32.mrb[40].mxu1 }
 0x2a5   : > { %v1654_v43 = vadd.f32 %v3587_v53, %v5069_v61  ;;  %v2337_v45 = vadd.f32 %v3667_v1, %v5074_v0  ;;  %v1645_v55 = vpop.f32.mrb[41].mxu0  ;;  %v2328_v59 = vpop.f32.mrb[41].mxu1 }
 0x2a6   : > { %v1646_v11 = vadd.f32 %v5069_v61, %v1645_v55  ;;  %v2329_v7 = vadd.f32 %v5074_v0, %v2328_v59  ;;  %v3588_v32 = vpop.f32.mrb[42].mxu0  ;;  %v3668_v26 = vpop.f32.mrb[42].mxu1 }
 0x2a7   : > { %v3202_v19 = vpack.c.bf16 %v1654_v43, %v1654_v43  ;;  %v3266_v25 = vpack.c.bf16 %v2337_v45, %v2337_v45  ;;  %v1657_v44 = vadd.f32 %v3588_v32, %v5069_v61  ;;  %v2340_v17 = vadd.f32 %v3668_v26, %v5074_v0  ;;  %v1648_v8 = vpop.f32.mrb[43].mxu0  ;;  %v2331_v16 = vpop.f32.mrb[43].mxu1 }
 0x2a8   : > { %v3200_v38 = vpack.c.bf16 %v1646_v11, %v1646_v11  ;;  %v3264_v14 = vpack.c.bf16 %v2329_v7, %v2329_v7  ;;  %v1649_v60 = vadd.f32 %v5069_v61, %v1648_v8  ;;  %v2332_v34 = vadd.f32 %v5074_v0, %v2331_v16 }
 0x2a9   : > { %2039 = vst.msk [vmem:[%s5085_s12 + $0x150] sm:$0xf] %vm1996_vm0, %v3202_v19  ;;  %3130 = vst.msk [vmem:[%s5085_s12 + $0x158] sm:$0xf] %vm1996_vm0, %v3266_v25  ;;  %v3203_v57 = vpack.c.bf16 %v1657_v44, %v1657_v44  ;;  %v3267_v30 = vpack.c.bf16 %v2340_v17, %v2340_v17 }
 0x2aa   : > { %2037 = vst.msk [vmem:[%s5085_s12 + $0x140] sm:$0xf] %vm1996_vm0, %v3200_v38  ;;  %3128 = vst.msk [vmem:[%s5085_s12 + $0x148] sm:$0xf] %vm1996_vm0, %v3264_v14  ;;  %v3201_v20 = vpack.c.bf16 %v1649_v60, %v1649_v60  ;;  %v3265_v9 = vpack.c.bf16 %v2332_v34, %v2332_v34 }
 0x2ab   : > { %2040 = vst.msk [vmem:[%s5085_s12 + $0x154] sm:$0xf] %vm1996_vm0, %v3203_v57  ;;  %3131 = vst.msk [vmem:[%s5085_s12 + $0x15c] sm:$0xf] %vm1996_vm0, %v3267_v30 }
 0x2ac   : > { %2038 = vst.msk [vmem:[%s5085_s12 + $0x144] sm:$0xf] %vm1996_vm0, %v3201_v20  ;;  %3129 = vst.msk [vmem:[%s5085_s12 + $0x14c] sm:$0xf] %vm1996_vm0, %v3265_v9  ;;  %v3591_v50 = vpop.f32.mrb[44].mxu0  ;;  %v3671_v31 = vpop.f32.mrb[44].mxu1 }
 0x2ad   : > { %v1670_v51 = vadd.f32 %v3591_v50, %v5069_v61  ;;  %v2353_v15 = vadd.f32 %v3671_v31, %v5074_v0  ;;  %v1661_v42 = vpop.f32.mrb[45].mxu0  ;;  %v2344_v33 = vpop.f32.mrb[45].mxu1 }
 0x2ae   : > { %v1662_v3 = vadd.f32 %v5069_v61, %v1661_v42  ;;  %v2345_v52 = vadd.f32 %v5074_v0, %v2344_v33  ;;  %v3592_v62 = vpop.f32.mrb[46].mxu0  ;;  %v3672_v6 = vpop.f32.mrb[46].mxu1 }
 0x2af   : > { %v3206_v37 = vpack.c.bf16 %v1670_v51, %v1670_v51  ;;  %v3270_v18 = vpack.c.bf16 %v2353_v15, %v2353_v15  ;;  %v1673_v63 = vadd.f32 %v3592_v62, %v5069_v61  ;;  %v2356_v29 = vadd.f32 %v3672_v6, %v5074_v0  ;;  %v1664_v28 = vpop.f32.mrb[47].mxu0  ;;  %v2347_v2 = vpop.f32.mrb[47].mxu1 }
 0x2b0   : > { %v3204_v47 = vpack.c.bf16 %v1662_v3, %v1662_v3  ;;  %v3268_v22 = vpack.c.bf16 %v2345_v52, %v2345_v52  ;;  %v1665_v23 = vadd.f32 %v5069_v61, %v1664_v28  ;;  %v2348_v56 = vadd.f32 %v5074_v0, %v2347_v2 }
 0x2b1   : > { %2043 = vst.msk [vmem:[%s5085_s12 + $0x170] sm:$0xf] %vm1996_vm0, %v3206_v37  ;;  %3134 = vst.msk [vmem:[%s5085_s12 + $0x178] sm:$0xf] %vm1996_vm0, %v3270_v18  ;;  %v3207_v36 = vpack.c.bf16 %v1673_v63, %v1673_v63  ;;  %v3271_v46 = vpack.c.bf16 %v2356_v29, %v2356_v29 }
 0x2b2   : > { %2041 = vst.msk [vmem:[%s5085_s12 + $0x160] sm:$0xf] %vm1996_vm0, %v3204_v47  ;;  %3132 = vst.msk [vmem:[%s5085_s12 + $0x168] sm:$0xf] %vm1996_vm0, %v3268_v22  ;;  %v3205_v24 = vpack.c.bf16 %v1665_v23, %v1665_v23  ;;  %v3269_v12 = vpack.c.bf16 %v2348_v56, %v2348_v56 }
 0x2b3   : > { %2044 = vst.msk [vmem:[%s5085_s12 + $0x174] sm:$0xf] %vm1996_vm0, %v3207_v36  ;;  %3135 = vst.msk [vmem:[%s5085_s12 + $0x17c] sm:$0xf] %vm1996_vm0, %v3271_v46 }
 0x2b4   : > { %2042 = vst.msk [vmem:[%s5085_s12 + $0x164] sm:$0xf] %vm1996_vm0, %v3205_v24  ;;  %3133 = vst.msk [vmem:[%s5085_s12 + $0x16c] sm:$0xf] %vm1996_vm0, %v3269_v12  ;;  %v3595_v10 = vpop.f32.mrb[48].mxu0  ;;  %v3675_v39 = vpop.f32.mrb[48].mxu1 }
 0x2b5   : > { %v1686_v5 = vadd.f32 %v3595_v10, %v5069_v61  ;;  %v2369_v41 = vadd.f32 %v3675_v39, %v5074_v0  ;;  %v1677_v58 = vpop.f32.mrb[49].mxu0  ;;  %v2360_v48 = vpop.f32.mrb[49].mxu1 }
 0x2b6   : > { %v1678_v13 = vadd.f32 %v5069_v61, %v1677_v58  ;;  %v2361_v4 = vadd.f32 %v5074_v0, %v2360_v48  ;;  %v3596_v49 = vpop.f32.mrb[50].mxu0  ;;  %v3676_v54 = vpop.f32.mrb[50].mxu1 }
 0x2b7   : > { %v3210_v27 = vpack.c.bf16 %v1686_v5, %v1686_v5  ;;  %v3274_v35 = vpack.c.bf16 %v2369_v41, %v2369_v41  ;;  %v1689_v40 = vadd.f32 %v3596_v49, %v5069_v61  ;;  %v2372_v21 = vadd.f32 %v3676_v54, %v5074_v0  ;;  %v1680_v53 = vpop.f32.mrb[51].mxu0  ;;  %v2363_v1 = vpop.f32.mrb[51].mxu1 }
 0x2b8   : > { %v3208_v43 = vpack.c.bf16 %v1678_v13, %v1678_v13  ;;  %v3272_v45 = vpack.c.bf16 %v2361_v4, %v2361_v4  ;;  %v1681_v55 = vadd.f32 %v5069_v61, %v1680_v53  ;;  %v2364_v59 = vadd.f32 %v5074_v0, %v2363_v1 }
 0x2b9   : > { %2047 = vst.msk [vmem:[%s5085_s12 + $0x190] sm:$0xf] %vm1996_vm0, %v3210_v27  ;;  %3138 = vst.msk [vmem:[%s5085_s12 + $0x198] sm:$0xf] %vm1996_vm0, %v3274_v35  ;;  %v3211_v11 = vpack.c.bf16 %v1689_v40, %v1689_v40  ;;  %v3275_v7 = vpack.c.bf16 %v2372_v21, %v2372_v21 }
 0x2ba   : > { %2045 = vst.msk [vmem:[%s5085_s12 + $0x180] sm:$0xf] %vm1996_vm0, %v3208_v43  ;;  %3136 = vst.msk [vmem:[%s5085_s12 + $0x188] sm:$0xf] %vm1996_vm0, %v3272_v45  ;;  %v3209_v32 = vpack.c.bf16 %v1681_v55, %v1681_v55  ;;  %v3273_v26 = vpack.c.bf16 %v2364_v59, %v2364_v59 }
 0x2bb   : > { %2048 = vst.msk [vmem:[%s5085_s12 + $0x194] sm:$0xf] %vm1996_vm0, %v3211_v11  ;;  %3139 = vst.msk [vmem:[%s5085_s12 + $0x19c] sm:$0xf] %vm1996_vm0, %v3275_v7 }
 0x2bc   : > { %2046 = vst.msk [vmem:[%s5085_s12 + $0x184] sm:$0xf] %vm1996_vm0, %v3209_v32  ;;  %3137 = vst.msk [vmem:[%s5085_s12 + $0x18c] sm:$0xf] %vm1996_vm0, %v3273_v26  ;;  %v3599_v19 = vpop.f32.mrb[52].mxu0  ;;  %v3679_v25 = vpop.f32.mrb[52].mxu1 }
 0x2bd   : > { %v1702_v44 = vadd.f32 %v3599_v19, %v5069_v61  ;;  %v2385_v17 = vadd.f32 %v3679_v25, %v5074_v0  ;;  %v1693_v8 = vpop.f32.mrb[53].mxu0  ;;  %v2376_v16 = vpop.f32.mrb[53].mxu1 }
 0x2be   : > { %v1694_v38 = vadd.f32 %v5069_v61, %v1693_v8  ;;  %v2377_v14 = vadd.f32 %v5074_v0, %v2376_v16  ;;  %v3600_v60 = vpop.f32.mrb[54].mxu0  ;;  %v3680_v34 = vpop.f32.mrb[54].mxu1 }
 0x2bf   : > { %v3214_v57 = vpack.c.bf16 %v1702_v44, %v1702_v44  ;;  %v3278_v30 = vpack.c.bf16 %v2385_v17, %v2385_v17  ;;  %v1705_v20 = vadd.f32 %v3600_v60, %v5069_v61  ;;  %v2388_v9 = vadd.f32 %v3680_v34, %v5074_v0  ;;  %v1696_v50 = vpop.f32.mrb[55].mxu0  ;;  %v2379_v31 = vpop.f32.mrb[55].mxu1 }
 0x2c0   : > { %v3212_v51 = vpack.c.bf16 %v1694_v38, %v1694_v38  ;;  %v3276_v15 = vpack.c.bf16 %v2377_v14, %v2377_v14  ;;  %v1697_v42 = vadd.f32 %v5069_v61, %v1696_v50  ;;  %v2380_v33 = vadd.f32 %v5074_v0, %v2379_v31 }
 0x2c1   : > { %2051 = vst.msk [vmem:[%s5085_s12 + $0x1b0] sm:$0xf] %vm1996_vm0, %v3214_v57  ;;  %3142 = vst.msk [vmem:[%s5085_s12 + $0x1b8] sm:$0xf] %vm1996_vm0, %v3278_v30  ;;  %v3215_v3 = vpack.c.bf16 %v1705_v20, %v1705_v20  ;;  %v3279_v52 = vpack.c.bf16 %v2388_v9, %v2388_v9 }
 0x2c2   : > { %2049 = vst.msk [vmem:[%s5085_s12 + $0x1a0] sm:$0xf] %vm1996_vm0, %v3212_v51  ;;  %3140 = vst.msk [vmem:[%s5085_s12 + $0x1a8] sm:$0xf] %vm1996_vm0, %v3276_v15  ;;  %v3213_v62 = vpack.c.bf16 %v1697_v42, %v1697_v42  ;;  %v3277_v6 = vpack.c.bf16 %v2380_v33, %v2380_v33 }
 0x2c3   : > { %2052 = vst.msk [vmem:[%s5085_s12 + $0x1b4] sm:$0xf] %vm1996_vm0, %v3215_v3  ;;  %3143 = vst.msk [vmem:[%s5085_s12 + $0x1bc] sm:$0xf] %vm1996_vm0, %v3279_v52 }
 0x2c4   : > { %2050 = vst.msk [vmem:[%s5085_s12 + $0x1a4] sm:$0xf] %vm1996_vm0, %v3213_v62  ;;  %3141 = vst.msk [vmem:[%s5085_s12 + $0x1ac] sm:$0xf] %vm1996_vm0, %v3277_v6  ;;  %v3603_v37 = vpop.f32.mrb[56].mxu0  ;;  %v3683_v18 = vpop.f32.mrb[56].mxu1 }
 0x2c5   : > { %v1718_v63 = vadd.f32 %v3603_v37, %v5069_v61  ;;  %v2401_v29 = vadd.f32 %v3683_v18, %v5074_v0  ;;  %v1709_v28 = vpop.f32.mrb[57].mxu0  ;;  %v2392_v2 = vpop.f32.mrb[57].mxu1 }
 0x2c6   : > { %v1710_v47 = vadd.f32 %v5069_v61, %v1709_v28  ;;  %v2393_v22 = vadd.f32 %v5074_v0, %v2392_v2  ;;  %v3604_v23 = vpop.f32.mrb[58].mxu0  ;;  %v3684_v56 = vpop.f32.mrb[58].mxu1 }
 0x2c7   : > { %v3218_v36 = vpack.c.bf16 %v1718_v63, %v1718_v63  ;;  %v3282_v46 = vpack.c.bf16 %v2401_v29, %v2401_v29  ;;  %v1721_v24 = vadd.f32 %v3604_v23, %v5069_v61  ;;  %v2404_v12 = vadd.f32 %v3684_v56, %v5074_v0  ;;  %v1712_v10 = vpop.f32.mrb[59].mxu0  ;;  %v2395_v39 = vpop.f32.mrb[59].mxu1 }
 0x2c8   : > { %v3216_v5 = vpack.c.bf16 %v1710_v47, %v1710_v47  ;;  %v3280_v41 = vpack.c.bf16 %v2393_v22, %v2393_v22  ;;  %v1713_v58 = vadd.f32 %v5069_v61, %v1712_v10  ;;  %v2396_v48 = vadd.f32 %v5074_v0, %v2395_v39 }
 0x2c9   : > { %2055 = vst.msk [vmem:[%s5085_s12 + $0x1d0] sm:$0xf] %vm1996_vm0, %v3218_v36  ;;  %3146 = vst.msk [vmem:[%s5085_s12 + $0x1d8] sm:$0xf] %vm1996_vm0, %v3282_v46  ;;  %v3219_v13 = vpack.c.bf16 %v1721_v24, %v1721_v24  ;;  %v3283_v4 = vpack.c.bf16 %v2404_v12, %v2404_v12 }
 0x2ca   : > { %2053 = vst.msk [vmem:[%s5085_s12 + $0x1c0] sm:$0xf] %vm1996_vm0, %v3216_v5  ;;  %3144 = vst.msk [vmem:[%s5085_s12 + $0x1c8] sm:$0xf] %vm1996_vm0, %v3280_v41  ;;  %v3217_v49 = vpack.c.bf16 %v1713_v58, %v1713_v58  ;;  %v3281_v54 = vpack.c.bf16 %v2396_v48, %v2396_v48 }
 0x2cb   : > { %2056 = vst.msk [vmem:[%s5085_s12 + $0x1d4] sm:$0xf] %vm1996_vm0, %v3219_v13  ;;  %3147 = vst.msk [vmem:[%s5085_s12 + $0x1dc] sm:$0xf] %vm1996_vm0, %v3283_v4 }
 0x2cc   : > { %2054 = vst.msk [vmem:[%s5085_s12 + $0x1c4] sm:$0xf] %vm1996_vm0, %v3217_v49  ;;  %3145 = vst.msk [vmem:[%s5085_s12 + $0x1cc] sm:$0xf] %vm1996_vm0, %v3281_v54 }
 0x310   : > { %v3607_v27 = vpop.f32.mrb[60].mxu0  ;;  %v3687_v35 = vpop.f32.mrb[60].mxu1 }
 0x311   : > { %v1734_v40 = vadd.f32 %v3607_v27, %v5069_v61  ;;  %v2417_v21 = vadd.f32 %v3687_v35, %v5074_v0  ;;  %v1725_v53 = vpop.f32.mrb[61].mxu0  ;;  %v2408_v1 = vpop.f32.mrb[61].mxu1 }
 0x312   : > { %v1726_v43 = vadd.f32 %v5069_v61, %v1725_v53  ;;  %v2409_v45 = vadd.f32 %v5074_v0, %v2408_v1  ;;  %v3608_v55 = vpop.f32.mrb[62].mxu0  ;;  %v3688_v59 = vpop.f32.mrb[62].mxu1 }
 0x313   : > { %v3222_v11 = vpack.c.bf16 %v1734_v40, %v1734_v40  ;;  %v3286_v7 = vpack.c.bf16 %v2417_v21, %v2417_v21  ;;  %v1737_v32 = vadd.f32 %v3608_v55, %v5069_v61  ;;  %v2420_v26 = vadd.f32 %v3688_v59, %v5074_v0  ;;  %v1728_v19 = vpop.f32.mrb[63].mxu0  ;;  %v2411_v25 = vpop.f32.mrb[63].mxu1 }
 0x314   : > { %v3220_v44 = vpack.c.bf16 %v1726_v43, %v1726_v43  ;;  %v3284_v17 = vpack.c.bf16 %v2409_v45, %v2409_v45  ;;  %v1729_v8 = vadd.f32 %v5069_v61, %v1728_v19  ;;  %v2412_v16 = vadd.f32 %v5074_v0, %v2411_v25 }
 0x315   : > { %2059 = vst.msk [vmem:[%s5085_s12 + $0x1f0] sm:$0xf] %vm1996_vm0, %v3222_v11  ;;  %3150 = vst.msk [vmem:[%s5085_s12 + $0x1f8] sm:$0xf] %vm1996_vm0, %v3286_v7  ;;  %v3223_v38 = vpack.c.bf16 %v1737_v32, %v1737_v32  ;;  %v3287_v14 = vpack.c.bf16 %v2420_v26, %v2420_v26 }
 0x316   : > { %2057 = vst.msk [vmem:[%s5085_s12 + $0x1e0] sm:$0xf] %vm1996_vm0, %v3220_v44  ;;  %3148 = vst.msk [vmem:[%s5085_s12 + $0x1e8] sm:$0xf] %vm1996_vm0, %v3284_v17  ;;  %v3221_v60 = vpack.c.bf16 %v1729_v8, %v1729_v8  ;;  %v3285_v34 = vpack.c.bf16 %v2412_v16, %v2412_v16 }
 0x317   : > { %2060 = vst.msk [vmem:[%s5085_s12 + $0x1f4] sm:$0xf] %vm1996_vm0, %v3223_v38  ;;  %3151 = vst.msk [vmem:[%s5085_s12 + $0x1fc] sm:$0xf] %vm1996_vm0, %v3287_v14 }
 0x318   : > { %2058 = vst.msk [vmem:[%s5085_s12 + $0x1e4] sm:$0xf] %vm1996_vm0, %v3221_v60  ;;  %3149 = vst.msk [vmem:[%s5085_s12 + $0x1ec] sm:$0xf] %vm1996_vm0, %v3285_v34 }
 0x319   : > { %s3289_s15 = sshll.u32 %s3962_s21, 11  ;;  %s2778_s26 = sshll.u32 %s5085_s12, 4  ;;  %s2779_s26 = int_to_ptr.vmem [resolvable:$true] %s2778_s26 }
 0x31a   : > { %s2761_s30 = scalar_lea.hbm %s5511_s5, %s3289_s15  ;;  %s3978_s9 = smov 2048  }
 0x31b   : > { %3698 = sst [smem:[#allocation9]] (%p4066_p9), %s3978_s9  ;;  %s3979_s16 = smov 4096  }
 0x31c   : > { %3699 = sst [smem:[#allocation9 + $0x1]] (%p4066_p9), %s3979_s16  ;;  %s3980_s14 = smov 32  }
 0x31d   : > { %3700 = sst [smem:[#allocation9 + $0x2]] (%p4066_p9), %s3980_s14  ;;  %s3981_s25 = smov 64  }
 0x31e   : > { %3701 = sst [smem:[#allocation9 + $0x3]] (%p4066_p9), %s3981_s25  ;;  %s3982_s21 = smov 4  }
 0x31f   : > { %3702 = sst [smem:[#allocation9 + $0x4]] (%p4066_p9), %s3981_s25  ;;  %s3983_s17 = smov [#allocation8]  }
 0x320   : > { %3703 = sst [smem:[#allocation9 + $0x5]] (%p4066_p9), %s3982_s21  ;;  %s3984_s27 = smov 0  }
 0x321   : > { %3704 = dma.general (%p4066_p9), %s2779_s26, 8192, %s2761_s30, %s2745_s13, %s3983_s17, [#allocation9], %s3984_s27, 0  }
 0x322 PF: > { %s2806_s29 = sand.u32 1, %s3950_s18   ;;  %p3707_p2 = pnand %p2907_p12, %p4073_p11 }
 0x323   : > { %s2807_s10 = scalar_lea.sflag [#allocation4], %s2806_s29 }
 0x324   : > { %3945 = dma.done.wait (!%p3707_p2), %s2807_s10, 8192  }
 0x325   : > { %3947 = vsyncadd (!%p3707_p2), %s2807_s10, 4294959104  ;;  %s21_s23 = sadd.s32 1, %s3970_s23   ;;  %s5659_s6 = sld [smem:[#allocation13_spill]] }
 0x326   : > { %p18_p3 = scmp.ge.s32.totalorder %s21_s23, 4   ;;  %s5660_s18 = smov %s3954_s19 }
 0x327   : > { %s5661_s19 = smov %s3958_s20  ;;  %s5662_s20 = smov %s4071_s7 }
 0x328   : > { %s5663_s21 = smov %s3966_s22  ;;  %20 = sbr.rel (!%p18_p3) target bundleno = 6 (0x6), region = 104 }
 0x32b   : > { %s5664_s22 = smov %s5659_s6 }
 0x32f   :  { %2812 = vsyncpa [#allocation3], 1 }
 0x330   :  { %2814 = vsyncpa [#allocation3 + $0x1], 1 }
 0x331   :  { %2815 = vsyncpa [#allocation4], 1 }
 0x332   :  { %2817 = vsyncpa [#allocation4 + $0x1], 1 }

</bundles_post_ra>
